<compile_context>
chip_gen: v7x
topology: tpu7x:2x2x1
jax: 0.10.0
libtpu: 0.0.40
codegen_flags: <defaults>
</compile_context>

<pallas_src>
import functools

import jax
import jax.numpy as jnp
from jax import lax
from jax.experimental import pallas as pl
from jax.experimental.pallas import tpu as pltpu


def _round_up(x, m):
    return (x + m - 1) // m * m


def _gems_decoder_kernel(x_ref, w1_ref, b1_ref, w2i_ref, b2i_ref,
                         w2c_ref, b2c_ref, emb_ref, out_ref,
                         *, tile_n, click_col):
    """One grid step = one TN-wide tile of the (B, S, n_pad) output."""
    j = pl.program_id(0)

    # ---- Stage 1 (tiny): hidden layer + per-slate logits -------------------
    # Recomputed every tile (instead of a j==0 scratch init) so the N axis can
    # be "parallel" across TensorCores without a per-core init hazard.  Cost is
    # ~2*B*256*(L + S*(D+1)) flops per tile — filler under the emb DMA stream.
    x = x_ref[...].astype(w1_ref.dtype)                                  # (B, L) bf16
    h = jnp.dot(x, w1_ref[...], preferred_element_type=jnp.float32)      # (B, 256) f32
    h = jnp.maximum(h + b1_ref[...], 0.0).astype(w2i_ref.dtype)          # (B, 256) bf16

    # Click logits for every slate position (kept f32 end-to-end).
    click = jnp.dot(h, w2c_ref[...], preferred_element_type=jnp.float32) # (B, S)
    click = click + b2c_ref[...]

    # Mask selecting the single "click" column inside this tile (if present).
    col = lax.broadcasted_iota(jnp.int32, (1, tile_n), 1) + j * tile_n   # (1, TN)
    click_mask = col == click_col

    # ---- Stage 2: streamed embedding GEMM, one slate position at a time ----
    emb_tile = emb_ref[...]                                              # (D, TN) bf16
    S = w2i_ref.shape[0]
    for s in range(S):                                                   # static unroll
        l_s = jnp.dot(h, w2i_ref[s], preferred_element_type=jnp.float32)
        l_s = (l_s + b2i_ref[s]).astype(emb_tile.dtype)                  # (B, D) bf16
        item_s = jnp.dot(l_s, emb_tile,
                         preferred_element_type=jnp.float32)             # (B, TN) f32
        # Inject the click logit into its dedicated zero-padded column so the
        # kernel has exactly one lane-dense output (no masked (B, S) store).
        item_s = item_s + jnp.where(click_mask, click[:, s:s + 1], 0.0)
        out_ref[:, s, :] = item_s


def prepare_params(W1, b1, W2, b2, emb, *, slate_size, tile_n=2048,
                   compute_dtype=jnp.bfloat16):
    """One-time repack of PyTorch-layout params into kernel-ready layout.

    W1 : (256, latent_dim)        (nn.Linear.weight is (out_features, in_features))
    b1 : (256,)
    W2 : ((D+1)*slate_size, 256)
    b2 : ((D+1)*slate_size,)
    emb: (num_items, D)           (nn.Embedding.weight)
    """
    hidden = W1.shape[0]
    S = slate_size
    N, D = emb.shape

    # Catalog tiling: one extra column reserved for the click logit, everything
    # padded so each output tile is a multiple of 256 lanes (v6e/v7x MXU width).
    tn = min(_round_up(tile_n, 256), _round_up(N + 1, 256))
    n_pad = _round_up(N + 1, tn)

    # fc1
    w1_t = W1.T.astype(compute_dtype)                                    # (L, 256)
    b1_r = b1.astype(jnp.float32).reshape(1, hidden)

    # fc2: split ONCE into an item slab (per slate position) and a click slab,
    # so the kernel never does a stride-(D+1) slice of the logits.
    w2_t = W2.T.reshape(hidden, S, D + 1)                                # (256, S, D+1)
    w2_item = jnp.transpose(w2_t[:, :, :D], (1, 0, 2)).astype(compute_dtype)   # (S, 256, D)
    w2_click = w2_t[:, :, D].astype(compute_dtype)                       # (256, S)
    b2_r = b2.astype(jnp.float32).reshape(S, D + 1)
    b2_item = b2_r[:, :D].reshape(S, 1, D)                               # (S, 1, D)
    b2_click = b2_r[:, D].reshape(1, S)                                  # (1, S)

    # Embedding table: transposed, bf16, zero-padded to the tiled width — done
    # once here, then streamed tile-by-tile at forward time.  (No W2@emb fold:
    # at production N that inflates streamed bytes by ~256/D.)
    emb_t = jnp.zeros((D, n_pad), jnp.float32).at[:, :N].set(emb.T.astype(jnp.float32))
    emb_t = emb_t.astype(compute_dtype)

    return {
        "w1": w1_t, "b1": b1_r,
        "w2_item": w2_item, "b2_item": b2_item,
        "w2_click": w2_click, "b2_click": b2_click,
        "emb_t": emb_t,
        "slate_size": S, "item_dim": D, "num_items": N,
        "num_cols_padded": n_pad, "tile_n": tn, "click_col": N,
    }


def gems_decoder_forward(proto_action, params):
    B, L = proto_action.shape
    S = params["slate_size"]
    D = params["item_dim"]
    N = params["num_items"]
    n_pad = params["num_cols_padded"]
    tn = params["tile_n"]
    click_col = params["click_col"]
    hidden = params["w1"].shape[1]
    n_tiles = n_pad // tn

    kernel = functools.partial(_gems_decoder_kernel, tile_n=tn, click_col=click_col)

    flops = (n_tiles * 2 * B * hidden * (L + S * D + S)   # stage 1 (recomputed/tile)
             + 2 * B * S * D * n_pad)                      # streamed embedding GEMM
    bytes_accessed = (B * L * 4
                      + params["w1"].size * 2 + params["w2_item"].size * 2
                      + params["w2_click"].size * 2
                      + (hidden + S * D + S) * 4
                      + params["emb_t"].size * 2
                      + B * S * n_pad * 4)

    out = pl.pallas_call(
        kernel,
        out_shape=jax.ShapeDtypeStruct((B, S, n_pad), jnp.float32),
        grid_spec=pltpu.PrefetchScalarGridSpec(
            num_scalar_prefetch=0,
            grid=(n_tiles,),
            in_specs=[
                pl.BlockSpec((B, L), lambda j: (0, 0)),               # resident
                pl.BlockSpec((L, hidden), lambda j: (0, 0)),          # resident
                pl.BlockSpec((1, hidden), lambda j: (0, 0)),          # resident
                pl.BlockSpec((S, hidden, D), lambda j: (0, 0, 0)),    # resident
                pl.BlockSpec((S, 1, D), lambda j: (0, 0, 0)),         # resident
                pl.BlockSpec((hidden, S), lambda j: (0, 0)),          # resident
                pl.BlockSpec((1, S), lambda j: (0, 0)),               # resident
                pl.BlockSpec((D, tn), lambda j: (0, j)),              # streamed over N
            ],
            out_specs=pl.BlockSpec((B, S, tn), lambda j: (0, 0, j)),
        ),
        compiler_params=pltpu.CompilerParams(
            dimension_semantics=("parallel",),          # v7x: split tiles across TCs
            vmem_limit_bytes=32 * 1024 * 1024,          # explicit for v5e/v7x headroom
        ),
        cost_estimate=pl.CostEstimate(
            flops=flops, transcendentals=0, bytes_accessed=bytes_accessed),
    )(proto_action, params["w1"], params["b1"],
      params["w2_item"], params["b2_item"],
      params["w2_click"], params["b2_click"],
      params["emb_t"])

    item_logits = out[:, :, :N]          # drop lane padding
    click_logits = out[:, :, click_col]  # click column injected by the kernel
    return item_logits, click_logits


if __name__ == "__main__":
    # Small shapes consistent with the module:
    #   batch B=8, latent_dim L=32, slate_size S=8, item_embedding_dim D=16,
    #   num_items N=500 (padded to 512 columns incl. the click column).
    B, L, S, D, N = 8, 32, 8, 16, 500
    HIDDEN = 256

    key = jax.random.PRNGKey(0)
    k_w1, k_b1, k_w2, k_b2, k_emb, k_x = jax.random.split(key, 6)

    # PyTorch-layout parameters (Linear.weight is (out_features, in_features)).
    W1 = jax.random.normal(k_w1, (HIDDEN, L), jnp.float32) * 0.05
    b1 = jax.random.normal(k_b1, (HIDDEN,), jnp.float32) * 0.05
    W2 = jax.random.normal(k_w2, ((D + 1) * S, HIDDEN), jnp.float32) * 0.05
    b2 = jax.random.normal(k_b2, ((D + 1) * S,), jnp.float32) * 0.05
    emb = jax.random.normal(k_emb, (N, D), jnp.float32)
    proto_action = jax.random.normal(k_x, (B, L), jnp.float32)

    # tile_n=256 -> 2 grid steps at this toy catalog size so the DMA/compute
    # pipeline (and the parallel axis) is actually exercised; production
    # default is 2048 lanes per tile.
    params = prepare_params(W1, b1, W2, b2, emb, slate_size=S, tile_n=256)

    item_logits, click_logits = gems_decoder_forward(proto_action, params)
    jax.block_until_ready((item_logits, click_logits))

    assert item_logits.shape == (B, S, N), item_logits.shape
    assert click_logits.shape == (B, S), click_logits.shape
    assert item_logits.dtype == jnp.float32
    assert click_logits.dtype == jnp.float32

    # Pure-JAX f32 reference of the PyTorch forward (bf16 MXU -> relaxed tol).
    h_ref = jnp.maximum(proto_action @ W1.T + b1, 0.0)
    logits_ref = (h_ref @ W2.T + b2).reshape(B, S, D + 1)
    item_ref = logits_ref[:, :, :D] @ emb.T
    click_ref = logits_ref[:, :, D]

    item_err = jnp.abs(item_logits - item_ref)
    click_err = jnp.abs(click_logits - click_ref)
    assert float(item_err.mean()) < 2e-2, float(item_err.mean())
    assert float(item_err.max()) < 1.5e-1, float(item_err.max())
    assert float(click_err.max()) < 5e-2, float(click_err.max())

    print("KERNEL_OK")
</pallas_src>

<mosaic_0001>
module attributes {stable_mosaic.version = 11 : i64} {
  func.func @_gems_decoder_kernel(%arg0: i32, %arg1: memref<8x32xf32, #tpu.memory_space<vmem>>, %arg2: memref<32x256xbf16, #tpu.memory_space<vmem>>, %arg3: memref<1x256xf32, #tpu.memory_space<vmem>>, %arg4: memref<8x256x16xbf16, #tpu.memory_space<vmem>>, %arg5: memref<8x1x16xf32, #tpu.memory_space<vmem>>, %arg6: memref<256x8xbf16, #tpu.memory_space<vmem>>, %arg7: memref<1x8xf32, #tpu.memory_space<vmem>>, %arg8: memref<16x256xbf16, #tpu.memory_space<vmem>>, %arg9: memref<8x8x256xf32, #tpu.memory_space<vmem>>) attributes {dimension_semantics = [#tpu.dimension_semantics<parallel>], iteration_bounds = array<i64: 2>, scalar_prefetch = 0 : i64, scratch_operands = 0 : i64, tpu.core_type = #tpu.core_type<tc>, window_params = [{pipeline_mode = #tpu.pipeline_mode<synchronous>, transform_indices = @transform_0, window_bounds = array<i64: 8, 32>}, {pipeline_mode = #tpu.pipeline_mode<synchronous>, transform_indices = @transform_1, window_bounds = array<i64: 32, 256>}, {pipeline_mode = #tpu.pipeline_mode<synchronous>, transform_indices = @transform_2, window_bounds = array<i64: 1, 256>}, {pipeline_mode = #tpu.pipeline_mode<synchronous>, transform_indices = @transform_3, window_bounds = array<i64: 8, 256, 16>}, {pipeline_mode = #tpu.pipeline_mode<synchronous>, transform_indices = @transform_4, window_bounds = array<i64: 8, 1, 16>}, {pipeline_mode = #tpu.pipeline_mode<synchronous>, transform_indices = @transform_5, window_bounds = array<i64: 256, 8>}, {pipeline_mode = #tpu.pipeline_mode<synchronous>, transform_indices = @transform_6, window_bounds = array<i64: 1, 8>}, {transform_indices = @transform_7, window_bounds = array<i64: 16, 256>}, {transform_indices = @transform_8, window_bounds = array<i64: 8, 8, 256>}]} {
    %c0 = arith.constant 0 : index
    %c0_0 = arith.constant 0 : index
    %0 = vector.load %arg1[%c0, %c0_0] : memref<8x32xf32, #tpu.memory_space<vmem>>, vector<8x32xf32>
    %1 = arith.truncf %0 : vector<8x32xf32> to vector<8x32xbf16>
    %c0_1 = arith.constant 0 : index
    %c0_2 = arith.constant 0 : index
    %2 = vector.load %arg2[%c0_1, %c0_2] : memref<32x256xbf16, #tpu.memory_space<vmem>>, vector<32x256xbf16>
    %cst = arith.constant dense<0.000000e+00> : vector<8x256xf32>
    %3 = tpu.matmul %1, %2, %cst {dimension_numbers = #tpu.dot_dimension_numbers<[1], [0], [0], [1], [0, 0, 1, 1], [], []>} : vector<8x32xbf16>, vector<32x256xbf16>, vector<8x256xf32> -> vector<8x256xf32>
    %c0_3 = arith.constant 0 : index
    %c0_4 = arith.constant 0 : index
    %4 = vector.load %arg3[%c0_3, %c0_4] : memref<1x256xf32, #tpu.memory_space<vmem>>, vector<1x256xf32>
    %5 = vector.broadcast %4 : vector<1x256xf32> to vector<8x256xf32>
    %6 = arith.addf %3, %5 : vector<8x256xf32>
    %cst_5 = arith.constant 0.000000e+00 : f32
    %7 = vector.broadcast %cst_5 : f32 to vector<8x256xf32>
    %8 = arith.maximumf %6, %7 : vector<8x256xf32>
    %9 = arith.truncf %8 : vector<8x256xf32> to vector<8x256xbf16>
    %c0_6 = arith.constant 0 : index
    %c0_7 = arith.constant 0 : index
    %10 = vector.load %arg6[%c0_6, %c0_7] : memref<256x8xbf16, #tpu.memory_space<vmem>>, vector<256x8xbf16>
    %cst_8 = arith.constant dense<0.000000e+00> : vector<8x8xf32>
    %11 = tpu.matmul %9, %10, %cst_8 {dimension_numbers = #tpu.dot_dimension_numbers<[1], [0], [0], [1], [0, 0, 1, 1], [], []>} : vector<8x256xbf16>, vector<256x8xbf16>, vector<8x8xf32> -> vector<8x8xf32>
    %c0_9 = arith.constant 0 : index
    %c0_10 = arith.constant 0 : index
    %12 = vector.load %arg7[%c0_9, %c0_10] : memref<1x8xf32, #tpu.memory_space<vmem>>, vector<1x8xf32>
    %13 = vector.broadcast %12 : vector<1x8xf32> to vector<8x8xf32>
    %14 = arith.addf %11, %13 : vector<8x8xf32>
    %15 = tpu.iota {dimensions = array<i32: 1>} : vector<1x256xi32>
    %c256_i32 = arith.constant 256 : i32
    %16 = arith.muli %arg0, %c256_i32 : i32
    %17 = vector.broadcast %16 : i32 to vector<1x256xi32>
    %18 = arith.addi %15, %17 : vector<1x256xi32>
    %c500_i32 = arith.constant 500 : i32
    %19 = vector.broadcast %c500_i32 : i32 to vector<1x256xi32>
    %20 = arith.cmpi eq, %18, %19 : vector<1x256xi32>
    %c0_11 = arith.constant 0 : index
    %c0_12 = arith.constant 0 : index
    %21 = vector.load %arg8[%c0_11, %c0_12] : memref<16x256xbf16, #tpu.memory_space<vmem>>, vector<16x256xbf16>
    %c0_13 = arith.constant 0 : index
    %c0_14 = arith.constant 0 : index
    %c0_15 = arith.constant 0 : index
    %22 = vector.load %arg4[%c0_13, %c0_14, %c0_15] : memref<8x256x16xbf16, #tpu.memory_space<vmem>>, vector<1x256x16xbf16>
    %23 = vector.shape_cast %22 : vector<1x256x16xbf16> to vector<256x16xbf16>
    %cst_16 = arith.constant dense<0.000000e+00> : vector<8x16xf32>
    %24 = tpu.matmul %9, %23, %cst_16 {dimension_numbers = #tpu.dot_dimension_numbers<[1], [0], [0], [1], [0, 0, 1, 1], [], []>} : vector<8x256xbf16>, vector<256x16xbf16>, vector<8x16xf32> -> vector<8x16xf32>
    %c0_17 = arith.constant 0 : index
    %c0_18 = arith.constant 0 : index
    %c0_19 = arith.constant 0 : index
    %25 = vector.load %arg5[%c0_17, %c0_18, %c0_19] : memref<8x1x16xf32, #tpu.memory_space<vmem>>, vector<1x1x16xf32>
    %26 = vector.shape_cast %25 : vector<1x1x16xf32> to vector<1x16xf32>
    %27 = vector.broadcast %26 : vector<1x16xf32> to vector<8x16xf32>
    %28 = arith.addf %24, %27 : vector<8x16xf32>
    %29 = arith.truncf %28 : vector<8x16xf32> to vector<8x16xbf16>
    %cst_20 = arith.constant dense<0.000000e+00> : vector<8x256xf32>
    %30 = tpu.matmul %29, %21, %cst_20 {dimension_numbers = #tpu.dot_dimension_numbers<[1], [0], [0], [1], [0, 0, 1, 1], [], []>} : vector<8x16xbf16>, vector<16x256xbf16>, vector<8x256xf32> -> vector<8x256xf32>
    %31 = vector.extract_strided_slice %14 {offsets = [0, 0], sizes = [8, 1], strides = [1, 1]} : vector<8x8xf32> to vector<8x1xf32>
    %cst_21 = arith.constant 0.000000e+00 : f32
    %32 = vector.shape_cast %20 : vector<1x256xi1> to vector<1x256xi1>
    %33 = vector.broadcast %32 : vector<1x256xi1> to vector<8x256xi1>
    %34 = vector.shape_cast %31 : vector<8x1xf32> to vector<8x1xf32>
    %35 = vector.broadcast %34 : vector<8x1xf32> to vector<8x256xf32>
    %36 = vector.broadcast %cst_21 : f32 to vector<8x256xf32>
    %37 = arith.select %33, %35, %36 : vector<8x256xi1>, vector<8x256xf32>
    %38 = arith.addf %30, %37 : vector<8x256xf32>
    %c0_22 = arith.constant 0 : index
    %c0_23 = arith.constant 0 : index
    %c0_24 = arith.constant 0 : index
    %39 = vector.load %arg9[%c0_22, %c0_23, %c0_24] : memref<8x8x256xf32, #tpu.memory_space<vmem>>, vector<8x1x256xf32>
    %40 = vector.shape_cast %39 : vector<8x1x256xf32> to vector<8x256xf32>
    %41 = vector.shape_cast %38 : vector<8x256xf32> to vector<8x1x256xf32>
    tpu.vector_store %arg9[%c0_22, %c0_23, %c0_24], %41 {strides = array<i32>} : memref<8x8x256xf32, #tpu.memory_space<vmem>>, vector<8x1x256xf32>,
    %c1 = arith.constant 1 : index
    %c0_25 = arith.constant 0 : index
    %c0_26 = arith.constant 0 : index
    %42 = vector.load %arg4[%c1, %c0_25, %c0_26] : memref<8x256x16xbf16, #tpu.memory_space<vmem>>, vector<1x256x16xbf16>
    %43 = vector.shape_cast %42 : vector<1x256x16xbf16> to vector<256x16xbf16>
    %cst_27 = arith.constant dense<0.000000e+00> : vector<8x16xf32>
    %44 = tpu.matmul %9, %43, %cst_27 {dimension_numbers = #tpu.dot_dimension_numbers<[1], [0], [0], [1], [0, 0, 1, 1], [], []>} : vector<8x256xbf16>, vector<256x16xbf16>, vector<8x16xf32> -> vector<8x16xf32>
    %c1_28 = arith.constant 1 : index
    %c0_29 = arith.constant 0 : index
    %c0_30 = arith.constant 0 : index
    %45 = vector.load %arg5[%c1_28, %c0_29, %c0_30] : memref<8x1x16xf32, #tpu.memory_space<vmem>>, vector<1x1x16xf32>
    %46 = vector.shape_cast %45 : vector<1x1x16xf32> to vector<1x16xf32>
    %47 = vector.broadcast %46 : vector<1x16xf32> to vector<8x16xf32>
    %48 = arith.addf %44, %47 : vector<8x16xf32>
    %49 = arith.truncf %48 : vector<8x16xf32> to vector<8x16xbf16>
    %cst_31 = arith.constant dense<0.000000e+00> : vector<8x256xf32>
    %50 = tpu.matmul %49, %21, %cst_31 {dimension_numbers = #tpu.dot_dimension_numbers<[1], [0], [0], [1], [0, 0, 1, 1], [], []>} : vector<8x16xbf16>, vector<16x256xbf16>, vector<8x256xf32> -> vector<8x256xf32>
    %51 = vector.extract_strided_slice %14 {offsets = [0, 1], sizes = [8, 1], strides = [1, 1]} : vector<8x8xf32> to vector<8x1xf32>
    %cst_32 = arith.constant 0.000000e+00 : f32
    %52 = vector.shape_cast %20 : vector<1x256xi1> to vector<1x256xi1>
    %53 = vector.broadcast %52 : vector<1x256xi1> to vector<8x256xi1>
    %54 = vector.shape_cast %51 : vector<8x1xf32> to vector<8x1xf32>
    %55 = vector.broadcast %54 : vector<8x1xf32> to vector<8x256xf32>
    %56 = vector.broadcast %cst_32 : f32 to vector<8x256xf32>
    %57 = arith.select %53, %55, %56 : vector<8x256xi1>, vector<8x256xf32>
    %58 = arith.addf %50, %57 : vector<8x256xf32>
    %c0_33 = arith.constant 0 : index
    %c1_34 = arith.constant 1 : index
    %c0_35 = arith.constant 0 : index
    %59 = vector.load %arg9[%c0_33, %c1_34, %c0_35] : memref<8x8x256xf32, #tpu.memory_space<vmem>>, vector<8x1x256xf32>
    %60 = vector.shape_cast %59 : vector<8x1x256xf32> to vector<8x256xf32>
    %61 = vector.shape_cast %58 : vector<8x256xf32> to vector<8x1x256xf32>
    tpu.vector_store %arg9[%c0_33, %c1_34, %c0_35], %61 {strides = array<i32>} : memref<8x8x256xf32, #tpu.memory_space<vmem>>, vector<8x1x256xf32>,
    %c2 = arith.constant 2 : index
    %c0_36 = arith.constant 0 : index
    %c0_37 = arith.constant 0 : index
    %62 = vector.load %arg4[%c2, %c0_36, %c0_37] : memref<8x256x16xbf16, #tpu.memory_space<vmem>>, vector<1x256x16xbf16>
    %63 = vector.shape_cast %62 : vector<1x256x16xbf16> to vector<256x16xbf16>
    %cst_38 = arith.constant dense<0.000000e+00> : vector<8x16xf32>
    %64 = tpu.matmul %9, %63, %cst_38 {dimension_numbers = #tpu.dot_dimension_numbers<[1], [0], [0], [1], [0, 0, 1, 1], [], []>} : vector<8x256xbf16>, vector<256x16xbf16>, vector<8x16xf32> -> vector<8x16xf32>
    %c2_39 = arith.constant 2 : index
    %c0_40 = arith.constant 0 : index
    %c0_41 = arith.constant 0 : index
    %65 = vector.load %arg5[%c2_39, %c0_40, %c0_41] : memref<8x1x16xf32, #tpu.memory_space<vmem>>, vector<1x1x16xf32>
    %66 = vector.shape_cast %65 : vector<1x1x16xf32> to vector<1x16xf32>
    %67 = vector.broadcast %66 : vector<1x16xf32> to vector<8x16xf32>
    %68 = arith.addf %64, %67 : vector<8x16xf32>
    %69 = arith.truncf %68 : vector<8x16xf32> to vector<8x16xbf16>
    %cst_42 = arith.constant dense<0.000000e+00> : vector<8x256xf32>
    %70 = tpu.matmul %69, %21, %cst_42 {dimension_numbers = #tpu.dot_dimension_numbers<[1], [0], [0], [1], [0, 0, 1, 1], [], []>} : vector<8x16xbf16>, vector<16x256xbf16>, vector<8x256xf32> -> vector<8x256xf32>
    %71 = vector.extract_strided_slice %14 {offsets = [0, 2], sizes = [8, 1], strides = [1, 1]} : vector<8x8xf32> to vector<8x1xf32>
    %cst_43 = arith.constant 0.000000e+00 : f32
    %72 = vector.shape_cast %20 : vector<1x256xi1> to vector<1x256xi1>
    %73 = vector.broadcast %72 : vector<1x256xi1> to vector<8x256xi1>
    %74 = vector.shape_cast %71 : vector<8x1xf32> to vector<8x1xf32>
    %75 = vector.broadcast %74 : vector<8x1xf32> to vector<8x256xf32>
    %76 = vector.broadcast %cst_43 : f32 to vector<8x256xf32>
    %77 = arith.select %73, %75, %76 : vector<8x256xi1>, vector<8x256xf32>
    %78 = arith.addf %70, %77 : vector<8x256xf32>
    %c0_44 = arith.constant 0 : index
    %c2_45 = arith.constant 2 : index
    %c0_46 = arith.constant 0 : index
    %79 = vector.load %arg9[%c0_44, %c2_45, %c0_46] : memref<8x8x256xf32, #tpu.memory_space<vmem>>, vector<8x1x256xf32>
    %80 = vector.shape_cast %79 : vector<8x1x256xf32> to vector<8x256xf32>
    %81 = vector.shape_cast %78 : vector<8x256xf32> to vector<8x1x256xf32>
    tpu.vector_store %arg9[%c0_44, %c2_45, %c0_46], %81 {strides = array<i32>} : memref<8x8x256xf32, #tpu.memory_space<vmem>>, vector<8x1x256xf32>,
    %c3 = arith.constant 3 : index
    %c0_47 = arith.constant 0 : index
    %c0_48 = arith.constant 0 : index
    %82 = vector.load %arg4[%c3, %c0_47, %c0_48] : memref<8x256x16xbf16, #tpu.memory_space<vmem>>, vector<1x256x16xbf16>
    %83 = vector.shape_cast %82 : vector<1x256x16xbf16> to vector<256x16xbf16>
    %cst_49 = arith.constant dense<0.000000e+00> : vector<8x16xf32>
    %84 = tpu.matmul %9, %83, %cst_49 {dimension_numbers = #tpu.dot_dimension_numbers<[1], [0], [0], [1], [0, 0, 1, 1], [], []>} : vector<8x256xbf16>, vector<256x16xbf16>, vector<8x16xf32> -> vector<8x16xf32>
    %c3_50 = arith.constant 3 : index
    %c0_51 = arith.constant 0 : index
    %c0_52 = arith.constant 0 : index
    %85 = vector.load %arg5[%c3_50, %c0_51, %c0_52] : memref<8x1x16xf32, #tpu.memory_space<vmem>>, vector<1x1x16xf32>
    %86 = vector.shape_cast %85 : vector<1x1x16xf32> to vector<1x16xf32>
    %87 = vector.broadcast %86 : vector<1x16xf32> to vector<8x16xf32>
    %88 = arith.addf %84, %87 : vector<8x16xf32>
    %89 = arith.truncf %88 : vector<8x16xf32> to vector<8x16xbf16>
    %cst_53 = arith.constant dense<0.000000e+00> : vector<8x256xf32>
    %90 = tpu.matmul %89, %21, %cst_53 {dimension_numbers = #tpu.dot_dimension_numbers<[1], [0], [0], [1], [0, 0, 1, 1], [], []>} : vector<8x16xbf16>, vector<16x256xbf16>, vector<8x256xf32> -> vector<8x256xf32>
    %91 = vector.extract_strided_slice %14 {offsets = [0, 3], sizes = [8, 1], strides = [1, 1]} : vector<8x8xf32> to vector<8x1xf32>
    %cst_54 = arith.constant 0.000000e+00 : f32
    %92 = vector.shape_cast %20 : vector<1x256xi1> to vector<1x256xi1>
    %93 = vector.broadcast %92 : vector<1x256xi1> to vector<8x256xi1>
    %94 = vector.shape_cast %91 : vector<8x1xf32> to vector<8x1xf32>
    %95 = vector.broadcast %94 : vector<8x1xf32> to vector<8x256xf32>
    %96 = vector.broadcast %cst_54 : f32 to vector<8x256xf32>
    %97 = arith.select %93, %95, %96 : vector<8x256xi1>, vector<8x256xf32>
    %98 = arith.addf %90, %97 : vector<8x256xf32>
    %c0_55 = arith.constant 0 : index
    %c3_56 = arith.constant 3 : index
    %c0_57 = arith.constant 0 : index
    %99 = vector.load %arg9[%c0_55, %c3_56, %c0_57] : memref<8x8x256xf32, #tpu.memory_space<vmem>>, vector<8x1x256xf32>
    %100 = vector.shape_cast %99 : vector<8x1x256xf32> to vector<8x256xf32>
    %101 = vector.shape_cast %98 : vector<8x256xf32> to vector<8x1x256xf32>
    tpu.vector_store %arg9[%c0_55, %c3_56, %c0_57], %101 {strides = array<i32>} : memref<8x8x256xf32, #tpu.memory_space<vmem>>, vector<8x1x256xf32>,
    %c4 = arith.constant 4 : index
    %c0_58 = arith.constant 0 : index
    %c0_59 = arith.constant 0 : index
    %102 = vector.load %arg4[%c4, %c0_58, %c0_59] : memref<8x256x16xbf16, #tpu.memory_space<vmem>>, vector<1x256x16xbf16>
    %103 = vector.shape_cast %102 : vector<1x256x16xbf16> to vector<256x16xbf16>
    %cst_60 = arith.constant dense<0.000000e+00> : vector<8x16xf32>
    %104 = tpu.matmul %9, %103, %cst_60 {dimension_numbers = #tpu.dot_dimension_numbers<[1], [0], [0], [1], [0, 0, 1, 1], [], []>} : vector<8x256xbf16>, vector<256x16xbf16>, vector<8x16xf32> -> vector<8x16xf32>
    %c4_61 = arith.constant 4 : index
    %c0_62 = arith.constant 0 : index
    %c0_63 = arith.constant 0 : index
    %105 = vector.load %arg5[%c4_61, %c0_62, %c0_63] : memref<8x1x16xf32, #tpu.memory_space<vmem>>, vector<1x1x16xf32>
    %106 = vector.shape_cast %105 : vector<1x1x16xf32> to vector<1x16xf32>
    %107 = vector.broadcast %106 : vector<1x16xf32> to vector<8x16xf32>
    %108 = arith.addf %104, %107 : vector<8x16xf32>
    %109 = arith.truncf %108 : vector<8x16xf32> to vector<8x16xbf16>
    %cst_64 = arith.constant dense<0.000000e+00> : vector<8x256xf32>
    %110 = tpu.matmul %109, %21, %cst_64 {dimension_numbers = #tpu.dot_dimension_numbers<[1], [0], [0], [1], [0, 0, 1, 1], [], []>} : vector<8x16xbf16>, vector<16x256xbf16>, vector<8x256xf32> -> vector<8x256xf32>
    %111 = vector.extract_strided_slice %14 {offsets = [0, 4], sizes = [8, 1], strides = [1, 1]} : vector<8x8xf32> to vector<8x1xf32>
    %cst_65 = arith.constant 0.000000e+00 : f32
    %112 = vector.shape_cast %20 : vector<1x256xi1> to vector<1x256xi1>
    %113 = vector.broadcast %112 : vector<1x256xi1> to vector<8x256xi1>
    %114 = vector.shape_cast %111 : vector<8x1xf32> to vector<8x1xf32>
    %115 = vector.broadcast %114 : vector<8x1xf32> to vector<8x256xf32>
    %116 = vector.broadcast %cst_65 : f32 to vector<8x256xf32>
    %117 = arith.select %113, %115, %116 : vector<8x256xi1>, vector<8x256xf32>
    %118 = arith.addf %110, %117 : vector<8x256xf32>
    %c0_66 = arith.constant 0 : index
    %c4_67 = arith.constant 4 : index
    %c0_68 = arith.constant 0 : index
    %119 = vector.load %arg9[%c0_66, %c4_67, %c0_68] : memref<8x8x256xf32, #tpu.memory_space<vmem>>, vector<8x1x256xf32>
    %120 = vector.shape_cast %119 : vector<8x1x256xf32> to vector<8x256xf32>
    %121 = vector.shape_cast %118 : vector<8x256xf32> to vector<8x1x256xf32>
    tpu.vector_store %arg9[%c0_66, %c4_67, %c0_68], %121 {strides = array<i32>} : memref<8x8x256xf32, #tpu.memory_space<vmem>>, vector<8x1x256xf32>,
    %c5 = arith.constant 5 : index
    %c0_69 = arith.constant 0 : index
    %c0_70 = arith.constant 0 : index
    %122 = vector.load %arg4[%c5, %c0_69, %c0_70] : memref<8x256x16xbf16, #tpu.memory_space<vmem>>, vector<1x256x16xbf16>
    %123 = vector.shape_cast %122 : vector<1x256x16xbf16> to vector<256x16xbf16>
    %cst_71 = arith.constant dense<0.000000e+00> : vector<8x16xf32>
    %124 = tpu.matmul %9, %123, %cst_71 {dimension_numbers = #tpu.dot_dimension_numbers<[1], [0], [0], [1], [0, 0, 1, 1], [], []>} : vector<8x256xbf16>, vector<256x16xbf16>, vector<8x16xf32> -> vector<8x16xf32>
    %c5_72 = arith.constant 5 : index
    %c0_73 = arith.constant 0 : index
    %c0_74 = arith.constant 0 : index
    %125 = vector.load %arg5[%c5_72, %c0_73, %c0_74] : memref<8x1x16xf32, #tpu.memory_space<vmem>>, vector<1x1x16xf32>
    %126 = vector.shape_cast %125 : vector<1x1x16xf32> to vector<1x16xf32>
    %127 = vector.broadcast %126 : vector<1x16xf32> to vector<8x16xf32>
    %128 = arith.addf %124, %127 : vector<8x16xf32>
    %129 = arith.truncf %128 : vector<8x16xf32> to vector<8x16xbf16>
    %cst_75 = arith.constant dense<0.000000e+00> : vector<8x256xf32>
    %130 = tpu.matmul %129, %21, %cst_75 {dimension_numbers = #tpu.dot_dimension_numbers<[1], [0], [0], [1], [0, 0, 1, 1], [], []>} : vector<8x16xbf16>, vector<16x256xbf16>, vector<8x256xf32> -> vector<8x256xf32>
    %131 = vector.extract_strided_slice %14 {offsets = [0, 5], sizes = [8, 1], strides = [1, 1]} : vector<8x8xf32> to vector<8x1xf32>
    %cst_76 = arith.constant 0.000000e+00 : f32
    %132 = vector.shape_cast %20 : vector<1x256xi1> to vector<1x256xi1>
    %133 = vector.broadcast %132 : vector<1x256xi1> to vector<8x256xi1>
    %134 = vector.shape_cast %131 : vector<8x1xf32> to vector<8x1xf32>
    %135 = vector.broadcast %134 : vector<8x1xf32> to vector<8x256xf32>
    %136 = vector.broadcast %cst_76 : f32 to vector<8x256xf32>
    %137 = arith.select %133, %135, %136 : vector<8x256xi1>, vector<8x256xf32>
    %138 = arith.addf %130, %137 : vector<8x256xf32>
    %c0_77 = arith.constant 0 : index
    %c5_78 = arith.constant 5 : index
    %c0_79 = arith.constant 0 : index
    %139 = vector.load %arg9[%c0_77, %c5_78, %c0_79] : memref<8x8x256xf32, #tpu.memory_space<vmem>>, vector<8x1x256xf32>
    %140 = vector.shape_cast %139 : vector<8x1x256xf32> to vector<8x256xf32>
    %141 = vector.shape_cast %138 : vector<8x256xf32> to vector<8x1x256xf32>
    tpu.vector_store %arg9[%c0_77, %c5_78, %c0_79], %141 {strides = array<i32>} : memref<8x8x256xf32, #tpu.memory_space<vmem>>, vector<8x1x256xf32>,
    %c6 = arith.constant 6 : index
    %c0_80 = arith.constant 0 : index
    %c0_81 = arith.constant 0 : index
    %142 = vector.load %arg4[%c6, %c0_80, %c0_81] : memref<8x256x16xbf16, #tpu.memory_space<vmem>>, vector<1x256x16xbf16>
    %143 = vector.shape_cast %142 : vector<1x256x16xbf16> to vector<256x16xbf16>
    %cst_82 = arith.constant dense<0.000000e+00> : vector<8x16xf32>
    %144 = tpu.matmul %9, %143, %cst_82 {dimension_numbers = #tpu.dot_dimension_numbers<[1], [0], [0], [1], [0, 0, 1, 1], [], []>} : vector<8x256xbf16>, vector<256x16xbf16>, vector<8x16xf32> -> vector<8x16xf32>
    %c6_83 = arith.constant 6 : index
    %c0_84 = arith.constant 0 : index
    %c0_85 = arith.constant 0 : index
    %145 = vector.load %arg5[%c6_83, %c0_84, %c0_85] : memref<8x1x16xf32, #tpu.memory_space<vmem>>, vector<1x1x16xf32>
    %146 = vector.shape_cast %145 : vector<1x1x16xf32> to vector<1x16xf32>
    %147 = vector.broadcast %146 : vector<1x16xf32> to vector<8x16xf32>
    %148 = arith.addf %144, %147 : vector<8x16xf32>
    %149 = arith.truncf %148 : vector<8x16xf32> to vector<8x16xbf16>
    %cst_86 = arith.constant dense<0.000000e+00> : vector<8x256xf32>
    %150 = tpu.matmul %149, %21, %cst_86 {dimension_numbers = #tpu.dot_dimension_numbers<[1], [0], [0], [1], [0, 0, 1, 1], [], []>} : vector<8x16xbf16>, vector<16x256xbf16>, vector<8x256xf32> -> vector<8x256xf32>
    %151 = vector.extract_strided_slice %14 {offsets = [0, 6], sizes = [8, 1], strides = [1, 1]} : vector<8x8xf32> to vector<8x1xf32>
    %cst_87 = arith.constant 0.000000e+00 : f32
    %152 = vector.shape_cast %20 : vector<1x256xi1> to vector<1x256xi1>
    %153 = vector.broadcast %152 : vector<1x256xi1> to vector<8x256xi1>
    %154 = vector.shape_cast %151 : vector<8x1xf32> to vector<8x1xf32>
    %155 = vector.broadcast %154 : vector<8x1xf32> to vector<8x256xf32>
    %156 = vector.broadcast %cst_87 : f32 to vector<8x256xf32>
    %157 = arith.select %153, %155, %156 : vector<8x256xi1>, vector<8x256xf32>
    %158 = arith.addf %150, %157 : vector<8x256xf32>
    %c0_88 = arith.constant 0 : index
    %c6_89 = arith.constant 6 : index
    %c0_90 = arith.constant 0 : index
    %159 = vector.load %arg9[%c0_88, %c6_89, %c0_90] : memref<8x8x256xf32, #tpu.memory_space<vmem>>, vector<8x1x256xf32>
    %160 = vector.shape_cast %159 : vector<8x1x256xf32> to vector<8x256xf32>
    %161 = vector.shape_cast %158 : vector<8x256xf32> to vector<8x1x256xf32>
    tpu.vector_store %arg9[%c0_88, %c6_89, %c0_90], %161 {strides = array<i32>} : memref<8x8x256xf32, #tpu.memory_space<vmem>>, vector<8x1x256xf32>,
    %c7 = arith.constant 7 : index
    %c0_91 = arith.constant 0 : index
    %c0_92 = arith.constant 0 : index
    %162 = vector.load %arg4[%c7, %c0_91, %c0_92] : memref<8x256x16xbf16, #tpu.memory_space<vmem>>, vector<1x256x16xbf16>
    %163 = vector.shape_cast %162 : vector<1x256x16xbf16> to vector<256x16xbf16>
    %cst_93 = arith.constant dense<0.000000e+00> : vector<8x16xf32>
    %164 = tpu.matmul %9, %163, %cst_93 {dimension_numbers = #tpu.dot_dimension_numbers<[1], [0], [0], [1], [0, 0, 1, 1], [], []>} : vector<8x256xbf16>, vector<256x16xbf16>, vector<8x16xf32> -> vector<8x16xf32>
    %c7_94 = arith.constant 7 : index
    %c0_95 = arith.constant 0 : index
    %c0_96 = arith.constant 0 : index
    %165 = vector.load %arg5[%c7_94, %c0_95, %c0_96] : memref<8x1x16xf32, #tpu.memory_space<vmem>>, vector<1x1x16xf32>
    %166 = vector.shape_cast %165 : vector<1x1x16xf32> to vector<1x16xf32>
    %167 = vector.broadcast %166 : vector<1x16xf32> to vector<8x16xf32>
    %168 = arith.addf %164, %167 : vector<8x16xf32>
    %169 = arith.truncf %168 : vector<8x16xf32> to vector<8x16xbf16>
    %cst_97 = arith.constant dense<0.000000e+00> : vector<8x256xf32>
    %170 = tpu.matmul %169, %21, %cst_97 {dimension_numbers = #tpu.dot_dimension_numbers<[1], [0], [0], [1], [0, 0, 1, 1], [], []>} : vector<8x16xbf16>, vector<16x256xbf16>, vector<8x256xf32> -> vector<8x256xf32>
    %171 = vector.extract_strided_slice %14 {offsets = [0, 7], sizes = [8, 1], strides = [1, 1]} : vector<8x8xf32> to vector<8x1xf32>
    %cst_98 = arith.constant 0.000000e+00 : f32
    %172 = vector.shape_cast %20 : vector<1x256xi1> to vector<1x256xi1>
    %173 = vector.broadcast %172 : vector<1x256xi1> to vector<8x256xi1>
    %174 = vector.shape_cast %171 : vector<8x1xf32> to vector<8x1xf32>
    %175 = vector.broadcast %174 : vector<8x1xf32> to vector<8x256xf32>
    %176 = vector.broadcast %cst_98 : f32 to vector<8x256xf32>
    %177 = arith.select %173, %175, %176 : vector<8x256xi1>, vector<8x256xf32>
    %178 = arith.addf %170, %177 : vector<8x256xf32>
    %c0_99 = arith.constant 0 : index
    %c7_100 = arith.constant 7 : index
    %c0_101 = arith.constant 0 : index
    %179 = vector.load %arg9[%c0_99, %c7_100, %c0_101] : memref<8x8x256xf32, #tpu.memory_space<vmem>>, vector<8x1x256xf32>
    %180 = vector.shape_cast %179 : vector<8x1x256xf32> to vector<8x256xf32>
    %181 = vector.shape_cast %178 : vector<8x256xf32> to vector<8x1x256xf32>
    tpu.vector_store %arg9[%c0_99, %c7_100, %c0_101], %181 {strides = array<i32>} : memref<8x8x256xf32, #tpu.memory_space<vmem>>, vector<8x1x256xf32>,
    return
  }
  func.func @transform_0(%arg0: i32) -> (i32, i32) {
    %c0_i32 = arith.constant 0 : i32
    %c0_i32_0 = arith.constant 0 : i32
    %c0_i32_1 = arith.constant 0 : i32
    return %c0_i32, %c0_i32_0 : i32, i32
  }
  func.func @transform_1(%arg0: i32) -> (i32, i32) {
    %c0_i32 = arith.constant 0 : i32
    %c0_i32_0 = arith.constant 0 : i32
    %c0_i32_1 = arith.constant 0 : i32
    return %c0_i32, %c0_i32_0 : i32, i32
  }
  func.func @transform_2(%arg0: i32) -> (i32, i32) {
    %c0_i32 = arith.constant 0 : i32
    %c0_i32_0 = arith.constant 0 : i32
    %c0_i32_1 = arith.constant 0 : i32
    return %c0_i32, %c0_i32_0 : i32, i32
  }
  func.func @transform_3(%arg0: i32) -> (i32, i32, i32) {
    %c0_i32 = arith.constant 0 : i32
    %c0_i32_0 = arith.constant 0 : i32
    %c0_i32_1 = arith.constant 0 : i32
    %c0_i32_2 = arith.constant 0 : i32
    return %c0_i32, %c0_i32_0, %c0_i32_1 : i32, i32, i32
  }
  func.func @transform_4(%arg0: i32) -> (i32, i32, i32) {
    %c0_i32 = arith.constant 0 : i32
    %c0_i32_0 = arith.constant 0 : i32
    %c0_i32_1 = arith.constant 0 : i32
    %c0_i32_2 = arith.constant 0 : i32
    return %c0_i32, %c0_i32_0, %c0_i32_1 : i32, i32, i32
  }
  func.func @transform_5(%arg0: i32) -> (i32, i32) {
    %c0_i32 = arith.constant 0 : i32
    %c0_i32_0 = arith.constant 0 : i32
    %c0_i32_1 = arith.constant 0 : i32
    return %c0_i32, %c0_i32_0 : i32, i32
  }
  func.func @transform_6(%arg0: i32) -> (i32, i32) {
    %c0_i32 = arith.constant 0 : i32
    %c0_i32_0 = arith.constant 0 : i32
    %c0_i32_1 = arith.constant 0 : i32
    return %c0_i32, %c0_i32_0 : i32, i32
  }
  func.func @transform_7(%arg0: i32) -> (i32, i32) {
    %c0_i32 = arith.constant 0 : i32
    %c0_i32_0 = arith.constant 0 : i32
    return %c0_i32, %arg0 : i32, i32
  }
  func.func @transform_8(%arg0: i32) -> (i32, i32, i32) {
    %c0_i32 = arith.constant 0 : i32
    %c0_i32_0 = arith.constant 0 : i32
    %c0_i32_1 = arith.constant 0 : i32
    return %c0_i32, %c0_i32_0, %arg0 : i32, i32, i32
  }
}

</mosaic_0001>

<bundles_post_ra>
// kernel: tpu_custom_call.1
= control target key start
LH: loop header
LB: loop body
LE: loop exit
PB: predicated region body
PF: predicated region fallthrough
CT: control target
= control target key end

     0   :  { %13 = vsyncpa [#allocation4], 0  ;;  %s5174_s0 = inlined_call_operand.vmem [shape: f32[8,32], index: 0, kind: input, shape index: {}]   ;;  %s5175_s1 = inlined_call_operand.vmem [shape: bf16[32,256], index: 1, kind: input, shape index: {}]   ;;  %s5176_s2 = inlined_call_operand.vmem [shape: f32[1,256], index: 2, kind: input, shape index: {}]   ;;  %s5177_s3 = inlined_call_operand.vmem [shape: bf16[8,256,16], index: 3, kind: input, shape index: {}]   ;;  %s5178_s4 = inlined_call_operand.vmem [shape: f32[8,1,16], index: 4, kind: input, shape index: {}]   ;;  %s5179_s5 = inlined_call_operand.vmem [shape: bf16[256,8], index: 5, kind: input, shape index: {}]   ;;  %s5180_s6 = inlined_call_operand.vmem [shape: f32[1,8], index: 6, kind: input, shape index: {}]   ;;  %s5181_s7 = inlined_call_operand.vmem [shape: bf16[16,512], index: 7, kind: input, shape index: {}]   ;;  %s5182_s8 = inlined_call_operand.hbm [shape: f32[8,8,512], index: 8, kind: output, shape index: {}]  }
   0x1   :  { %15 = vsyncpa [#allocation4 + $0x1], 0  ;;  %s4226_s27 = smov 0   ;;  %s4228_s28 = smov 0  }
   0x2   :  { %s4230_s29 = smov 0   ;;  %s4232_s30 = smov 0  }
   0x3 LB: > { %s3213_s9 = sadd.s32 4294967295, %s4166_s30   ;;  %s3214_s10 = sadd.s32 4294967294, %s4166_s30   ;;  %s4166_s30 = sphi %s4232_s30, %s5190_s30   ;;  %s4162_s29 = sphi %s4230_s29, %s5189_s29   ;;  %s4158_s28 = sphi %s4228_s28, %s5188_s28   ;;  %s4154_s27 = sphi %s4226_s27, %s5187_s27  }
   0x4   : > { %s4249_s11 = sadd.s32 1, %s4166_s30   ;;  %s175_s12 = sadd.s32 1, %s4162_s29 }
   0x5   : > { %s172_s13 = ssub.s32 %s4166_s30, %s4249_s11  ;;  %p182_p0 = scmp.ne.s32.totalorder %s4162_s29, %s4158_s28 }
   0x6   : > { %p173_p1 = scmp.eq.s32.totalorder %s172_s13, 0  ;;  %p183_p2 = scmp.eq.s32.totalorder %s4166_s30, 0 }
   0x7   : > { %p212_p3 = scmp.eq.s32.totalorder %s3213_s9, 1  ;;  %p217_p4 = scmp.ne.s32.totalorder %s4158_s28, %s4154_s27 }
   0x8   : > { %s4262_s14 = scalar_select %p173_p1, %s4162_s29, %s175_s12  }
   0x9   : > { %p184_p5 = por %p183_p2, %p182_p0  ;;  %p4264_p6 = por %p212_p3, %p182_p0 }
   0xa   : > { %p218_p7 = scmp.eq.s32.totalorder %s3214_s10, 1  ;;  %p3216_p9 = scmp.ge.s32.totalorder %s4166_s30, 2 }
   0xc   : > { %p4268_p8 = por %p218_p7, %p217_p4  ;;  %255 = sbr.rel (%p3216_p9) target bundleno = 26 (0x1a), region = 44 }
  0x13   : > { %258 = sbr.rel (!%p184_p5) target bundleno = 26 (0x1a), region = 48  ;;  %s260_s17 = sand.u32 (%p184_p5), 1, %s4162_s29  }
  0x14   : > { %s3691_s18 = sshll.u32 (%p184_p5), %s4166_s30, 3  ;;  %s3217_s19 = sshll.u32 (%p184_p5), %s260_s17, 4 }
  0x15   : > { %s265_s22 = scalar_lea.vmem (%p184_p5), %s5181_s7, %s3691_s18  ;;  %s262_s23 = scalar_lea.vmem (%p184_p5), [#allocation2], %s3217_s19 }
  0x16   : > { %v295_v0 = vld [vmem:[%s265_s22] sm:$0xff] (%p184_p5)  ;;  %v297_v1 = vld [vmem:[%s265_s22 + $0x10] sm:$0xff] (%p184_p5) }
  0x17   : > { %296 = vst [vmem:[%s262_s23] sm:$0xff] (%p184_p5), %v295_v0  ;;  %298 = vst [vmem:[%s262_s23 + $0x8] sm:$0xff] (%p184_p5), %v297_v1 }
  0x1a PF: > { %p3220_p10 = scmp.ge.s32.totalorder %s4166_s30, 1  ;;  %p303_p11 = scmp.lt.s32.totalorder %s4166_s30, 3 }
  0x1c   : > { %p304_p12 = pnand %p3220_p10, %p303_p11 }
  0x1d   : > { %v3951_v2 = vld [vmem:[%s5175_s1 + $0x4] ss:$8 sps:$4 sm:$0xff] (!%p304_p12)   ;;  %v3953_v3 = vld [vmem:[%s5175_s1] ss:$8 sps:$4 sm:$0xff] (!%p304_p12)   ;;  %v4168_v4 = vmov (!%p304_p12), 0   ;;  %vm384_vm0 = vcmask (!%p304_p12), 261120   ;;  %v354_v42 = vlaneseq (!%p304_p12) }
  0x1e   : > { %307 = sbr.rel (%p304_p12) target bundleno = 2257 (0x8d1), region = 86  ;;  %420 = vmatprep.mubr.bf16.mxu1 (!%p304_p12), %v4168_v4  ;;  %3942 = vset.pattern.permute.xlu0 (!%p304_p12), %v4168_v4  ;;  %v3954_v5 = vld [vmem:[%s5175_s1 + $0x14] ss:$8 sps:$4 sm:$0xff] (!%p304_p12)   ;;  %v3956_v6 = vld [vmem:[%s5175_s1 + $0x10] ss:$8 sps:$4 sm:$0xff] (!%p304_p12)   ;;  %v346_v7 = vld [vmem:[%s5174_s0] sm:$0xff] (!%p304_p12) }
  0x1f   : > { %388 = vmatprep.subr.bf16.mxu1 (!%p304_p12), %v3951_v2  ;;  %v3957_v8 = vld [vmem:[%s5177_s3 + $0x40] sm:$0xff] (!%p304_p12)   ;;  %v347_v11 = vpack.c.bf16 (!%p304_p12), %v346_v7, %v346_v7  ;;  %v3961_v13 = vld [vmem:[%s5177_s3 + $0x48] sm:$0xff] (!%p304_p12)   ;;  %v3965_v17 = vld [vmem:[%s5177_s3 + $0x50] sm:$0xff] (!%p304_p12)   ;;  %v4399_v43 = vshrl.u32 (!%p304_p12), %v354_v42, 7  ;;  %s4464_s12 = sand.u32 (!%p304_p12), 1, %s4158_s28   ;;  %vm816_vm1 = vcmask (!%p304_p12), 130048  }
  0x20   : > { %389 = vmatpush1.bf16.msra.mxu1 (!%p304_p12), %v3953_v3  ;;  %v3958_v9 = vld [vmem:[%s5179_s5 + $0x40] sm:$0xff] (!%p304_p12)   ;;  %3715 = vmatprep.subr.bf16.mxu0 (!%p304_p12), %v3957_v8  ;;  %v3962_v14 = vld [vmem:[%s5179_s5 + $0x48] sm:$0xff] (!%p304_p12)   ;;  %v3966_v18 = vld [vmem:[%s5179_s5 + $0x50] sm:$0xff] (!%p304_p12)   ;;  %s3221_s13 = sshll.u32 (!%p304_p12), %s4464_s12, 4  ;;  %s4548_s22 = sshll.u32 (!%p304_p12), %s3213_s9, 8  ;;  %vm4568_vm4 = vcmp.lt.s32.totalorder (!%p304_p12), %v354_v42, 256 }
  0x21   : > { %390 = vmatprep.subr.bf16.mxu1 (!%p304_p12), %v3954_v5  ;;  %v3959_v10 = vld [vmem:[%s5177_s3] sm:$0xff] (!%p304_p12)   ;;  %v3963_v15 = vld [vmem:[%s5177_s3 + $0x8] sm:$0xff] (!%p304_p12)   ;;  %v3967_v19 = vld [vmem:[%s5177_s3 + $0x10] sm:$0xff] (!%p304_p12)   ;;  %v356_v44 = vsub.s32 (!%p304_p12), 0, %v4399_v43  ;;  %v360_v46 = vsub.s32 (!%p304_p12), 1, %v4399_v43  ;;  %s312_s17 = scalar_lea.vmem (!%p304_p12), [#allocation2], %s3221_s13  ;;  %s5102_s20 = scalar_lea.hbm (!%p304_p12), %s5182_s8, %s4548_s22 }
  0x22   : > { %v3960_v12 = vld [vmem:[%s5179_s5] sm:$0xff] (!%p304_p12)   ;;  %3716 = vmatpush3.bf16.msra.mxu0 (!%p304_p12), %v3959_v10  ;;  %v3964_v16 = vld [vmem:[%s5179_s5 + $0x8] sm:$0xff] (!%p304_p12)   ;;  %v3968_v20 = vld [vmem:[%s5179_s5 + $0x10] sm:$0xff] (!%p304_p12)   ;;  %s3222_s9 = sshll.u32 (!%p304_p12), %s4464_s12, 7 }
  0x23   : > { %3717 = vmatprep.subr.bf16.mxu0 (!%p304_p12), %v3961_v13  ;;  %v3969_v21 = vld [vmem:[%s5177_s3 + $0x58] sm:$0xff] (!%p304_p12)   ;;  %v3973_v25 = vld [vmem:[%s5177_s3 + $0x60] sm:$0xff] (!%p304_p12)   ;;  %v3977_v29 = vld [vmem:[%s5177_s3 + $0x68] sm:$0xff] (!%p304_p12)   ;;  %v4169_v13 = vmov (!%p304_p12), 2   ;;  %s4576_s23 = scalar_lea.vmem (!%p304_p12), [#allocation3], %s3222_s9  ;;  %s4177_s9 = smov (!%p304_p12), [#allocation3]  }
  0x24   : > { %391 = vmatpush1.bf16.msra.mxu1 (!%p304_p12), %v3956_v6  ;;  %v3970_v22 = vld [vmem:[%s5179_s5 + $0x58] sm:$0xff] (!%p304_p12)   ;;  %v3974_v26 = vld [vmem:[%s5179_s5 + $0x60] sm:$0xff] (!%p304_p12)   ;;  %v3978_v30 = vld [vmem:[%s5179_s5 + $0x68] sm:$0xff] (!%p304_p12)   ;;  %3944 = vset.pattern.permute.xlu1 (!%p304_p12), %v4169_v13  ;;  %s4108_s24 = sshll.u32 (!%p304_p12), %s4177_s9, 4  ;;  %s4109_s24 = int_to_ptr.vmem [resolvable:$false] %s4108_s24 }
  0x25   : > { %3693 = vmatprep.subr.bf16.mxu1 %v3958_v9  ;;  %v3971_v23 = vld [vmem:[%s5177_s3 + $0x18] sm:$0xff]   ;;  %v3975_v27 = vld [vmem:[%s5177_s3 + $0x20] sm:$0xff]   ;;  %v3979_v31 = vld [vmem:[%s5177_s3 + $0x28] sm:$0xff]   ;;  %s4110_s25 = scalar_lea.vmem %s4109_s24, 4096 }
  0x26   : > { %3718 = vmatpush3.bf16.msra.mxu0 %v3963_v15  ;;  %v3972_v24 = vld [vmem:[%s5179_s5 + $0x18] sm:$0xff]   ;;  %v3976_v28 = vld [vmem:[%s5179_s5 + $0x20] sm:$0xff]   ;;  %v3980_v32 = vld [vmem:[%s5179_s5 + $0x28] sm:$0xff]  }
  0x27   : > { %3227 = vmatmul.mubr.msk.bf16.vlgmr.msra.gmra.mrb[0].mxu1 %vm384_vm0, %v347_v11  ;;  %3719 = vmatprep.subr.bf16.mxu0 %v3965_v17  ;;  %v3981_v33 = vld [vmem:[%s5177_s3 + $0x70] sm:$0xff]   ;;  %v3985_v37 = vld [vmem:[%s5177_s3 + $0x78] sm:$0xff]   ;;  %v3989_v41 = vld [vmem:[%s5177_s3 + $0xc0] sm:$0xff]  }
  0x28   : > { %3694 = vmatpush3.bf16.msra.mxu1 %v3960_v12  ;;  %v3982_v34 = vld [vmem:[%s5179_s5 + $0x70] sm:$0xff]   ;;  %v3986_v38 = vld [vmem:[%s5179_s5 + $0x78] sm:$0xff]   ;;  %v352_v45 = vld [vmem:[%s5176_s2] sm:$0x3] }
  0x29   : > { %3695 = vmatprep.subr.bf16.mxu1 %v3962_v14  ;;  %v3983_v35 = vld [vmem:[%s5177_s3 + $0x30] sm:$0xff]   ;;  %v3987_v39 = vld [vmem:[%s5177_s3 + $0x38] sm:$0xff]   ;;  %v357_v47 = vrot.slane %v352_v45, %v356_v44  ;;  %v361_v48 = vrot.slane %v352_v45, %v360_v46  ;;  %v3990_v58 = vld [vmem:[%s5177_s3 + $0x80] sm:$0xff]  }
  0x2a   : > { %3720 = vmatpush3.bf16.msra.mxu0 %v3967_v19  ;;  %v3984_v36 = vld [vmem:[%s5179_s5 + $0x30] sm:$0xff]   ;;  %v3988_v40 = vld [vmem:[%s5179_s5 + $0x38] sm:$0xff]   ;;  %v3991_v60 = vld [vmem:[%s5177_s3 + $0xc8] sm:$0xff]  }
  0x2b   : > { %3721 = vmatprep.subr.bf16.mxu0 %v3969_v21  ;;  %v3992_v61 = vld [vmem:[%s5177_s3 + $0x88] sm:$0xff]   ;;  %v3993_v62 = vld [vmem:[%s5177_s3 + $0xd0] sm:$0xff]   ;;  %v3995_v0 = vld [vmem:[%s5177_s3 + $0xd8] sm:$0xff]  }
  0x2c   : > { %3696 = vmatpush3.bf16.msra.mxu1 %v3964_v16  ;;  %v3994_v63 = vld [vmem:[%s5177_s3 + $0x90] sm:$0xff]   ;;  %v3996_v1 = vld [vmem:[%s5177_s3 + $0x98] sm:$0xff]   ;;  %v3997_v2 = vld [vmem:[%s5177_s3 + $0xe0] sm:$0xff]  }
  0x2d   : > { %3697 = vmatprep.subr.bf16.mxu1 %v3966_v18  ;;  %v3998_v3 = vld [vmem:[%s5177_s3 + $0xa0] sm:$0xff]   ;;  %v3999_v5 = vld [vmem:[%s5177_s3 + $0xe8] sm:$0xff]   ;;  %v4001_v7 = vld [vmem:[%s5177_s3 + $0xf0] sm:$0xff]  }
  0x2e   : > { %3722 = vmatpush3.bf16.msra.mxu0 %v3971_v23  ;;  %v4000_v6 = vld [vmem:[%s5177_s3 + $0xa8] sm:$0xff]   ;;  %v4002_v8 = vld [vmem:[%s5177_s3 + $0xb0] sm:$0xff]   ;;  %v4003_v9 = vld [vmem:[%s5177_s3 + $0xf8] sm:$0xff]  }
  0x2f   : > { %3723 = vmatprep.subr.bf16.mxu0 %v3973_v25  ;;  %v4004_v10 = vld [vmem:[%s5177_s3 + $0xb8] sm:$0xff]   ;;  %v3228_v16 = vld [vmem:[%s5180_s6] ss:$0 sm:$0xff] }
  0x30   : > { %3698 = vmatpush3.bf16.msra.mxu1 %v3968_v20  ;;  %v4467_v11 = vld [vmem:[%s312_s17 + $0x4] ss:$8 sps:$4 sm:$0xff]   ;;  %v4469_v12 = vld [vmem:[%s312_s17] ss:$8 sps:$4 sm:$0xff]   ;;  %s3146_s17 = sshll.u32 %s4576_s23, 4  ;;  %s5112_s17 = int_to_ptr.vmem [resolvable:$true] %s3146_s17 }
  0x31   : > { %3699 = vmatprep.subr.bf16.mxu1 %v3970_v22  ;;  %v3246_v18 = vld [vmem:[%s5178_s4] ss:$0 sm:$0xff]  ;;  %s4104_s21 = scalar_lea.vmem %s5112_s17, 2048  ;;  %p4111_p2 = scmp.lt.s32.totalorder %s5112_s17, %s4109_s24 }
  0x32   : > { %3724 = vmatpush3.bf16.msra.mxu0 %v3975_v27  ;;  %v4009_v45 = vld [vmem:[%s5177_s3 + $0x100] sm:$0xff]   ;;  %p4105_p13 = scmp.ne.s32.totalorder %s5112_s17, %s4104_s21  ;;  %p4112_p3 = scmp.lt.s32.totalorder %s4110_s25, %s4104_s21 }
  0x33   : > { %3725 = vmatprep.subr.bf16.mxu0 %v3977_v29  ;;  %v4008_v29 = vld [vmem:[%s5177_s3 + $0x140] sm:$0xff]  }
  0x34   : > { %3700 = vmatpush3.bf16.msra.mxu1 %v3972_v24  ;;  %p4106_p0 = pnand %p4105_p13, %p4264_p6  ;;  %p4113_p4 = por %p4112_p3, %p4111_p2 }
  0x35   : > { %3701 = vmatprep.subr.bf16.mxu1 %v3974_v26 }
  0x36   : > { %3726 = vmatpush3.bf16.msra.mxu0 %v3979_v31  ;;  %v4171_v31 = vmov 1   ;;  %p4107_p1 = pneg %p4106_p0 }
  0x37   : > { %3727 = vmatprep.subr.bf16.mxu0 %v3981_v33  ;;  %v4173_v33 = vmov 5  }
  0x38   : > { %3702 = vmatpush3.bf16.msra.mxu1 %v3976_v28  ;;  %p4114_p5 = pnand %p4113_p4, %p4107_p1 }
  0x39   : > { %3703 = vmatprep.subr.bf16.mxu1 %v3978_v30  ;;  %v4170_v30 = vmov 3  }
  0x3a   : > { %3728 = vmatpush3.bf16.msra.mxu0 %v3983_v35  ;;  %v4175_v35 = vmov 7  }
  0x3b   : > { %3729 = vmatprep.subr.bf16.mxu0 %v3985_v37  ;;  %v3306_v37 = vld [vmem:[%s5178_s4 + $0x1] ss:$0 sm:$0xff] }
  0x3c   : > { %3704 = vmatpush3.bf16.msra.mxu1 %v3980_v32  ;;  %v4172_v32 = vmov 4  }
  0x3d   : > { %3705 = vmatprep.subr.bf16.mxu1 %v3982_v34  ;;  %v4174_v34 = vmov 6  }
  0x3e   : > { %3730 = vmatpush3.bf16.msra.mxu0 %v3987_v39 }
  0x3f   : > { %3737 = vmatprep.subr.bf16.mxu0 %v3989_v41 }
  0x40   : > { %3706 = vmatpush3.bf16.msra.mxu1 %v3984_v36 }
  0x41   : > { %3707 = vmatprep.subr.bf16.mxu1 %v3986_v38 }
  0x44   : > { %3708 = vmatpush3.bf16.msra.mxu1 %v3988_v40 }
  0x45   : > { %820 = vmatprep.subr.bf16.mxu1 %v4467_v11 }
  0xfa   : > { %v422_v49 = vpop.f32.mrb[0].mxu1 }
  0xfb   : > { %v423_v50 = vadd.f32 %v422_v49, %v357_v47  ;;  %v424_v51 = vpop.f32.mrb[1].mxu1  ;;  %v4010_v47 = vld [vmem:[%s5177_s3 + $0x148] sm:$0xff]   ;;  %v4012_v49 = vld [vmem:[%s5177_s3 + $0x150] sm:$0xff]  }
  0xfc   : > { %v425_v52 = vadd.f32 %v424_v51, %v361_v48  ;;  %v426_v53 = vpop.f32.mrb[2].mxu1  ;;  %v4011_v48 = vld [vmem:[%s5177_s3 + $0x108] sm:$0xff]   ;;  %v4014_v51 = vld [vmem:[%s5177_s3 + $0x158] sm:$0xff]  }
  0xfd   : > { %v429_v54 = vmax.f32 %v423_v50, 0.0  ;;  %v427_v55 = vpop.f32.mrb[3].mxu1  ;;  %v4013_v50 = vld [vmem:[%s5177_s3 + $0x110] sm:$0xff]   ;;  %v4016_v53 = vld [vmem:[%s5177_s3 + $0x160] sm:$0xff]  }
  0xfe   : > { %v430_v56 = vmax.f32 %v425_v52, 0.0  ;;  %v4015_v52 = vld [vmem:[%s5177_s3 + $0x118] sm:$0xff]   ;;  %v4018_v55 = vld [vmem:[%s5177_s3 + $0x168] sm:$0xff]  }
  0xff   : > { %v4411_v59 = vpack.c.bf16 %v429_v54, %v429_v54  ;;  %v4017_v54 = vld [vmem:[%s5177_s3 + $0x120] sm:$0xff]  }
 0x100   : > { %v4406_v57 = vpack.c.bf16 %v430_v56, %v430_v56  ;;  %v4019_v56 = vld [vmem:[%s5177_s3 + $0x128] sm:$0xff]  }
 0x102   : > { %600 = vmatprep.mubr.bf16.mxu1 %v4406_v57  ;;  %786 = vmatprep.mubr.bf16.mxu0 %v4406_v57 }
 0x103   : > { %601 = vmatmul.mubr.bf16.vlgmr.msra.gmra.mrb[4].mxu1 %v4411_v59  ;;  %787 = vmatmul.mubr.bf16.vlgmr.msra.gmra.mrb[0].mxu0 %v4411_v59 }
 0x104   : > { %3738 = vmatpush3.bf16.msra.mxu0 %v3990_v58  ;;  %1117 = vmatprep.mubr.bf16.mxu0 %v4406_v57  ;;  %v4020_v58 = vld [vmem:[%s5177_s3 + $0x170] sm:$0xff]  }
 0x105   : > { %3739 = vmatprep.subr.bf16.mxu0 %v3991_v60  ;;  %852 = vmatprep.mubr.bf16.mxu1 %v4168_v4  ;;  %v4021_v60 = vld [vmem:[%s5177_s3 + $0x130] sm:$0xff]  }
 0x106   : > { %821 = vmatpush1.bf16.msra.mxu1 %v4469_v12 }
 0x107   : > { %1135 = vmatprep.subr.bf16.mxu1 %v4467_v11 }
 0x108   : > { %3740 = vmatpush3.bf16.msra.mxu0 %v3992_v61  ;;  %v4022_v61 = vld [vmem:[%s5177_s3 + $0x178] sm:$0xff]  }
 0x109   : > { %3741 = vmatprep.subr.bf16.mxu0 %v3993_v62  ;;  %v4023_v62 = vld [vmem:[%s5177_s3 + $0x138] sm:$0xff]  }
 0x10c   : > { %3742 = vmatpush3.bf16.msra.mxu0 %v3994_v63  ;;  %v4024_v63 = vld [vmem:[%s5177_s3 + $0x1c0] sm:$0xff]  }
 0x10d   : > { %3743 = vmatprep.subr.bf16.mxu0 %v3995_v0  ;;  %v609_v0 = vand.u32 127, %v354_v42 }
 0x110   : > { %3744 = vmatpush3.bf16.msra.mxu0 %v3996_v1  ;;  %v610_v1 = vadd.s32 128, %v609_v0 }
 0x111   : > { %3745 = vmatprep.subr.bf16.mxu0 %v3997_v2  ;;  %v612_v2 = vstv %s4548_s22  ;;  %s3133_s22 = scalar_lea.sflag [#allocation4], %s4464_s12 }
 0x114   : > { %3746 = vmatpush3.bf16.msra.mxu0 %v3998_v3  ;;  %v4551_v3 = vadd.s32 %v612_v2, %v609_v0 }
 0x115   : > { %3747 = vmatprep.subr.bf16.mxu0 %v3999_v5  ;;  %v4176_v5 = vmov 1966171168  }
 0x116   : > { %vm615_vm2 = vcmp.eq.s32.totalorder %v4551_v3, 500 }
 0x118   : > { %3748 = vmatpush3.bf16.msra.mxu0 %v4000_v6  ;;  %v866_v6 = vunpack.c.l.s4 %v4176_v5 }
 0x119   : > { %3749 = vmatprep.subr.bf16.mxu0 %v4001_v7  ;;  %v4553_v7 = vadd.s32 %v612_v2, %v610_v1 }
 0x11b   : > { %vm616_vm3 = vcmp.eq.s32.totalorder %v4553_v7, 500 }
 0x11c   : > { %3750 = vmatpush3.bf16.msra.mxu0 %v4002_v8 }
 0x11d   : > { %3751 = vmatprep.subr.bf16.mxu0 %v4003_v9  ;;  %v867_v9 = vunpack.c.0.s8 %v866_v6  ;;  %v4025_v6 = vld [vmem:[%s5177_s3 + $0x180] sm:$0xff]  }
 0x120   : > { %3752 = vmatpush3.bf16.msra.mxu0 %v4004_v10 }
 0x121   : > { %1447 = vmatprep.subr.bf16.mxu0 %v4467_v11 }
 0x123   : > { %1118 = vmatmul.mubr.bf16.vlgmr.msra.gmra.mrb[4].mxu0 %v4411_v59 }
 0x124   : > { %1479 = vmatprep.mubr.bf16.mxu0 %v4168_v4  ;;  %1448 = vmatpush1.bf16.msra.mxu0 %v4469_v12 }
 0x125   : > { %3781 = vmatprep.subr.bf16.mxu0 %v4024_v63 }
 0x1d6   : > { %v3709_v14 = vpop.f32.mrb[4].mxu1  ;;  %v3731_v15 = vpop.f32.mrb[0].mxu0 }
 0x1d7   : > { %v3710_v17 = vpop.f32.mrb[5].mxu1  ;;  %v3732_v19 = vpop.f32.mrb[1].mxu0 }
 0x1d8   : > { %v3711_v20 = vadd.f32 %v3710_v17, %v3709_v14  ;;  %v3733_v21 = vadd.f32 %v3732_v19, %v3731_v15  ;;  %v3712_v22 = vpop.f32.mrb[6].mxu1  ;;  %v3734_v23 = vpop.f32.mrb[2].mxu0  ;;  %v4562_v17 = vsub.s32 %v867_v9, %v4399_v43  ;;  %v4026_v9 = vld [vmem:[%s5177_s3 + $0x1c8] sm:$0xff]  }
 0x1d9   : > { %v3713_v24 = vpop.f32.mrb[7].mxu1  ;;  %v3735_v25 = vpop.f32.mrb[3].mxu0 }
 0x1da   : > { %v603_v26 = vadd.f32 %v3711_v20, %v3228_v16  ;;  %v789_v27 = vadd.f32 %v3733_v21, %v3246_v18 }
 0x1dc   : > { %v794_v28 = vpack.c.bf16 %v789_v27, %v789_v27  ;;  %1439 = vperm.xlu1 %3944, %v603_v26   ;;  %801 = vperm.xlu0 %3942, %v603_v26  }
 0x1de   : > { %3265 = vmatmul.mubr.msk.bf16.vlgmr.msra.gmra.mrb[8].mxu1 %vm816_vm1, %v794_v28 }
 0x1df   : > { %1136 = vmatpush1.bf16.msra.mxu1 %v4469_v12  ;;  %1167 = vmatprep.mubr.bf16.mxu1 %v4168_v4 }
 0x1e0   : > { %3945 = vset.pattern.permute.xlu1 %v4170_v30  ;;  %3943 = vset.pattern.permute.xlu0 %v4171_v31 }
 0x1e1   : > { %1751 = vperm.xlu1 %3945, %v603_v26   ;;  %1127 = vperm.xlu0 %3943, %v603_v26  }
 0x1e2   : > { %3759 = vmatprep.subr.bf16.mxu1 %v4008_v29 }
 0x1e5   : > { %3946 = vset.pattern.permute.xlu1 %v4172_v32  ;;  %3947 = vset.pattern.permute.xlu0 %v4173_v33 }
 0x1e6   : > { %2063 = vperm.xlu1 %3946, %v603_v26   ;;  %2375 = vperm.xlu0 %3947, %v603_v26  }
 0x1ea   : > { %3948 = vset.pattern.permute.xlu1 %v4174_v34  ;;  %3950 = vset.pattern.permute.xlu0 %v4175_v35 }
 0x1eb   : > { %2687 = vperm.xlu1 %3948, %v603_v26  }
 0x1ef   : > { %3949 = vset.pattern.permute.xlu1 %v4175_v35 }
 0x1f0   : > { %2999 = vperm.xlu1 %3949, %v603_v26  }
 0x1f6   : > { %v3753_v36 = vpop.f32.mrb[4].mxu0 }
 0x1f7   : > { %v3754_v38 = vpop.f32.mrb[5].mxu0 }
 0x1f8   : > { %v3755_v39 = vadd.f32 %v3754_v38, %v3753_v36  ;;  %v3756_v40 = vpop.f32.mrb[6].mxu0 }
 0x1f9   : > { %v3757_v41 = vpop.f32.mrb[7].mxu0 }
 0x1fa   : > { %v1120_v44 = vadd.f32 %v3755_v39, %v3306_v37 }
 0x1fc   : > { %v1125_v46 = vpack.c.bf16 %v1120_v44, %v1120_v44 }
 0x1fe   : > { %3323 = vmatmul.mubr.msk.bf16.vlgmr.msra.gmra.mrb[12].mxu1 %vm816_vm1, %v1125_v46 }
 0x1ff   : > { %3760 = vmatpush3.bf16.msra.mxu1 %v4009_v45  ;;  %1429 = vmatprep.mubr.bf16.mxu1 %v4406_v57 }
 0x200   : > { %3761 = vmatprep.subr.bf16.mxu1 %v4010_v47 }
 0x203   : > { %3762 = vmatpush3.bf16.msra.mxu1 %v4011_v48 }
 0x204   : > { %3763 = vmatprep.subr.bf16.mxu1 %v4012_v49 }
 0x207   : > { %3764 = vmatpush3.bf16.msra.mxu1 %v4013_v50 }
 0x208   : > { %3765 = vmatprep.subr.bf16.mxu1 %v4014_v51 }
 0x20b   : > { %3766 = vmatpush3.bf16.msra.mxu1 %v4015_v52 }
 0x20c   : > { %3767 = vmatprep.subr.bf16.mxu1 %v4016_v53 }
 0x20f   : > { %3768 = vmatpush3.bf16.msra.mxu1 %v4017_v54 }
 0x210   : > { %3769 = vmatprep.subr.bf16.mxu1 %v4018_v55 }
 0x213   : > { %3770 = vmatpush3.bf16.msra.mxu1 %v4019_v56 }
 0x214   : > { %3771 = vmatprep.subr.bf16.mxu1 %v4020_v58 }
 0x217   : > { %3772 = vmatpush3.bf16.msra.mxu1 %v4021_v60 }
 0x218   : > { %3773 = vmatprep.subr.bf16.mxu1 %v4022_v61 }
 0x21b   : > { %3774 = vmatpush3.bf16.msra.mxu1 %v4023_v62  ;;  %v3365_v62 = vld [vmem:[%s5178_s4 + $0x2] ss:$0 sm:$0xff] }
 0x21c   : > { %1759 = vmatprep.subr.bf16.mxu1 %v4467_v11 }
 0x21e   : > { %1430 = vmatmul.mubr.bf16.vlgmr.msra.gmra.mrb[16].mxu1 %v4411_v59 }
 0x21f   : > { %1760 = vmatpush1.bf16.msra.mxu1 %v4469_v12  ;;  %1791 = vmatprep.mubr.bf16.mxu1 %v4168_v4 }
 0x25b   : > { %v802_v8 = vpop.permute.xlu0 %801 }
 0x25c   : > { %v804_v10 = vsel %vm615_vm2, %v802_v8, 0.0  ;;  %v805_v15 = vsel %vm616_vm3, %v802_v8, 0.0 }
 0x260   : > { %v1128_v34 = vpop.permute.xlu0 %1127 }
 0x261   : > { %v1130_v35 = vsel %vm615_vm2, %v1128_v34, 0.0  ;;  %v1131_v38 = vsel %vm616_vm3, %v1128_v34, 0.0 }
 0x2b1   : > { %v854_v13 = vpop.f32.mrb[8].mxu1 }
 0x2b2   : > { %v855_v14 = vadd.f32 %v854_v13, %v804_v10  ;;  %v856_v16 = vpop.f32.mrb[9].mxu1  ;;  %v4027_v10 = vld [vmem:[%s5177_s3 + $0x188] sm:$0xff]   ;;  %v4028_v13 = vld [vmem:[%s5177_s3 + $0x1d0] sm:$0xff]  }
 0x2b3   : > { %v857_v18 = vadd.f32 %v856_v16, %v805_v15  ;;  %v858_v19 = vpop.f32.mrb[10].mxu1  ;;  %v4030_v15 = vld [vmem:[%s5177_s3 + $0x1d8] sm:$0xff]  }
 0x2b4   : > { %v859_v20 = vpop.f32.mrb[11].mxu1  ;;  %v4031_v16 = vld [vmem:[%s5177_s3 + $0x198] sm:$0xff]   ;;  %v4033_v19 = vld [vmem:[%s5177_s3 + $0x1a0] sm:$0xff]  }
 0x2b5   : > { %v863_v21 = vcombine.low %v855_v14, %v857_v18  ;;  %v864_v22 = vcombine.high %v855_v14, %v857_v18  ;;  %v4029_v14 = vld [vmem:[%s5177_s3 + $0x190] sm:$0xff]   ;;  %v4032_v18 = vld [vmem:[%s5177_s3 + $0x1e0] sm:$0xff]   ;;  %v4034_v20 = vld [vmem:[%s5177_s3 + $0x1e8] sm:$0xff]  }
 0x2b7   : > { %v871_v23 = vrot.slane %v863_v21, %v4562_v17  ;;  %v878_v24 = vrot.slane %v864_v22, %v4562_v17  ;;  %v4035_v21 = vld [vmem:[%s5177_s3 + $0x1a8] sm:$0xff]   ;;  %v4036_v22 = vld [vmem:[%s5177_s3 + $0x1f0] sm:$0xff]  }
 0x2b9   : > { %v879_v26 = vcombine.high %v871_v23, %v871_v23  ;;  %v880_v27 = vcombine.high %v878_v24, %v878_v24  ;;  %v887_v43 = vrot.slane %v871_v23, %v4562_v17  ;;  %v894_v28 = vrot.slane %v878_v24, %v4562_v17  ;;  %v4037_v23 = vld [vmem:[%s5177_s3 + $0x1b0] sm:$0xff]   ;;  %v4038_v24 = vld [vmem:[%s5177_s3 + $0x1f8] sm:$0xff]  }
 0x2bb   : > { %v901_v29 = vrot.slane %v879_v26, %v4562_v17  ;;  %v908_v30 = vrot.slane %v880_v27, %v4562_v17  ;;  %v909_v31 = vcombine.high %v887_v43, %v887_v43  ;;  %v910_v32 = vcombine.high %v894_v28, %v894_v28  ;;  %925 = vst.msk [vmem:[%s4576_s23] ss:$8 sm:$0x3] %vm4568_vm4, %v887_v43  ;;  %v4039_v26 = vld [vmem:[%s5177_s3 + $0x1b8] sm:$0xff]   ;;  %v4040_v27 = vld [vmem:[%s5177_s3 + $0x240] sm:$0xff]   ;;  %v1440_v43 = vpop.permute.xlu1 %1439 }
 0x2bc   : > { %3269 = vst.msk [vmem:[%s4576_s23 + $0x40] ss:$8 sm:$0x3] %vm4568_vm4, %v894_v28  ;;  %3803 = vmatprep.subr.bf16.mxu1 %v4040_v27  ;;  %v1442_v28 = vsel %vm615_vm2, %v1440_v43, 0.0 }
 0x2bd   : > { %v911_v42 = vcombine.high %v901_v29, %v901_v29  ;;  %v912_v33 = vcombine.high %v908_v30, %v908_v30  ;;  %3266 = vst.msk [vmem:[%s4576_s23 + $0x10] ss:$8 sm:$0x3] %vm4568_vm4, %v901_v29  ;;  %3267 = vst.msk [vmem:[%s4576_s23 + $0x20] ss:$8 sm:$0x3] %vm4568_vm4, %v909_v31 }
 0x2be   : > { %3270 = vst.msk [vmem:[%s4576_s23 + $0x50] ss:$8 sm:$0x3] %vm4568_vm4, %v908_v30  ;;  %3271 = vst.msk [vmem:[%s4576_s23 + $0x60] ss:$8 sm:$0x3] %vm4568_vm4, %v910_v32 }
 0x2bf   : > { %3268 = vst.msk [vmem:[%s4576_s23 + $0x30] ss:$8 sm:$0x3] %vm4568_vm4, %v911_v42  ;;  %3272 = vst.msk [vmem:[%s4576_s23 + $0x70] ss:$8 sm:$0x3] %vm4568_vm4, %v912_v33 }
 0x2c0   : > { %v1443_v31 = vsel %vm616_vm3, %v1440_v43, 0.0 }
 0x2d1   : > { %v1169_v36 = vpop.f32.mrb[12].mxu1 }
 0x2d2   : > { %v1170_v37 = vadd.f32 %v1169_v36, %v1130_v35  ;;  %v1171_v39 = vpop.f32.mrb[13].mxu1 }
 0x2d3   : > { %v1172_v40 = vadd.f32 %v1171_v39, %v1131_v38  ;;  %v1173_v41 = vpop.f32.mrb[14].mxu1 }
 0x2d4   : > { %v1174_v44 = vpop.f32.mrb[15].mxu1 }
 0x2d5   : > { %v1178_v45 = vcombine.low %v1170_v37, %v1172_v40  ;;  %v1179_v46 = vcombine.high %v1170_v37, %v1172_v40 }
 0x2d7   : > { %v1186_v47 = vrot.slane %v1178_v45, %v4562_v17  ;;  %v1193_v48 = vrot.slane %v1179_v46, %v4562_v17 }
 0x2d9   : > { %v1194_v49 = vcombine.high %v1186_v47, %v1186_v47  ;;  %v1195_v50 = vcombine.high %v1193_v48, %v1193_v48  ;;  %v1202_v51 = vrot.slane %v1186_v47, %v4562_v17  ;;  %v1209_v52 = vrot.slane %v1193_v48, %v4562_v17 }
 0x2db   : > { %v1216_v53 = vrot.slane %v1194_v49, %v4562_v17  ;;  %v1223_v54 = vrot.slane %v1195_v50, %v4562_v17  ;;  %v1224_v55 = vcombine.high %v1202_v51, %v1202_v51  ;;  %v1225_v56 = vcombine.high %v1209_v52, %v1209_v52  ;;  %3324 = vst.msk [vmem:[%s4576_s23 + $0x1] ss:$8 sm:$0x3] %vm4568_vm4, %v1202_v51 }
 0x2dc   : > { %3328 = vst.msk [vmem:[%s4576_s23 + $0x41] ss:$8 sm:$0x3] %vm4568_vm4, %v1209_v52  ;;  %v3424_v52 = vld [vmem:[%s5178_s4 + $0x3] ss:$0 sm:$0xff] }
 0x2dd   : > { %v1226_v58 = vcombine.high %v1216_v53, %v1216_v53  ;;  %v1227_v60 = vcombine.high %v1223_v54, %v1223_v54  ;;  %3325 = vst.msk [vmem:[%s4576_s23 + $0x11] ss:$8 sm:$0x3] %vm4568_vm4, %v1216_v53  ;;  %3326 = vst.msk [vmem:[%s4576_s23 + $0x21] ss:$8 sm:$0x3] %vm4568_vm4, %v1224_v55 }
 0x2de   : > { %3329 = vst.msk [vmem:[%s4576_s23 + $0x51] ss:$8 sm:$0x3] %vm4568_vm4, %v1223_v54  ;;  %3330 = vst.msk [vmem:[%s4576_s23 + $0x61] ss:$8 sm:$0x3] %vm4568_vm4, %v1225_v56 }
 0x2df   : > { %3327 = vst.msk [vmem:[%s4576_s23 + $0x31] ss:$8 sm:$0x3] %vm4568_vm4, %v1226_v58  ;;  %3331 = vst.msk [vmem:[%s4576_s23 + $0x71] ss:$8 sm:$0x3] %vm4568_vm4, %v1227_v60 }
 0x2e0   : > { %v4041_v60 = vld [vmem:[%s5177_s3 + $0x200] sm:$0xff]  }
 0x2f1   : > { %v3775_v61 = vpop.f32.mrb[16].mxu1 }
 0x2f2   : > { %v3776_v63 = vpop.f32.mrb[17].mxu1 }
 0x2f3   : > { %v3777_v0 = vadd.f32 %v3776_v63, %v3775_v61  ;;  %v3778_v1 = vpop.f32.mrb[18].mxu1  ;;  %v4043_v63 = vld [vmem:[%s5177_s3 + $0x208] sm:$0xff]  }
 0x2f4   : > { %v3779_v2 = vpop.f32.mrb[19].mxu1  ;;  %v4045_v1 = vld [vmem:[%s5177_s3 + $0x210] sm:$0xff]  }
 0x2f5   : > { %v1432_v5 = vadd.f32 %v3777_v0, %v3365_v62  ;;  %v4042_v62 = vld [vmem:[%s5177_s3 + $0x248] sm:$0xff]   ;;  %v4044_v0 = vld [vmem:[%s5177_s3 + $0x250] sm:$0xff]   ;;  %v4046_v2 = vld [vmem:[%s5177_s3 + $0x258] sm:$0xff]  }
 0x2f7   : > { %v1437_v8 = vpack.c.bf16 %v1432_v5, %v1432_v5  ;;  %v4047_v5 = vld [vmem:[%s5177_s3 + $0x218] sm:$0xff]  }
 0x2f9   : > { %3382 = vmatmul.mubr.msk.bf16.vlgmr.msra.gmra.mrb[8].mxu0 %vm816_vm1, %v1437_v8  ;;  %v4049_v8 = vld [vmem:[%s5177_s3 + $0x220] sm:$0xff]  }
 0x2fa   : > { %3782 = vmatpush3.bf16.msra.mxu0 %v4025_v6  ;;  %1741 = vmatprep.mubr.bf16.mxu0 %v4406_v57  ;;  %v4048_v6 = vld [vmem:[%s5177_s3 + $0x260] sm:$0xff]  }
 0x2fb   : > { %3783 = vmatprep.subr.bf16.mxu0 %v4026_v9  ;;  %v4050_v9 = vld [vmem:[%s5177_s3 + $0x268] sm:$0xff]  }
 0x2fe   : > { %3784 = vmatpush3.bf16.msra.mxu0 %v4027_v10  ;;  %v4051_v10 = vld [vmem:[%s5177_s3 + $0x228] sm:$0xff]  }
 0x2ff   : > { %3785 = vmatprep.subr.bf16.mxu0 %v4028_v13  ;;  %v4052_v13 = vld [vmem:[%s5177_s3 + $0x270] sm:$0xff]  }
 0x302   : > { %3786 = vmatpush3.bf16.msra.mxu0 %v4029_v14  ;;  %v4053_v14 = vld [vmem:[%s5177_s3 + $0x230] sm:$0xff]  }
 0x303   : > { %3787 = vmatprep.subr.bf16.mxu0 %v4030_v15  ;;  %v4054_v15 = vld [vmem:[%s5177_s3 + $0x278] sm:$0xff]  }
 0x306   : > { %3788 = vmatpush3.bf16.msra.mxu0 %v4031_v16  ;;  %v4055_v16 = vld [vmem:[%s5177_s3 + $0x238] sm:$0xff]  }
 0x307   : > { %3789 = vmatprep.subr.bf16.mxu0 %v4032_v18  ;;  %v4056_v18 = vld [vmem:[%s5177_s3 + $0x2c0] sm:$0xff]  }
 0x30a   : > { %3790 = vmatpush3.bf16.msra.mxu0 %v4033_v19  ;;  %v1752_v19 = vpop.permute.xlu1 %1751 }
 0x30b   : > { %3791 = vmatprep.subr.bf16.mxu0 %v4034_v20  ;;  %v1754_v20 = vsel %vm615_vm2, %v1752_v19, 0.0 }
 0x30e   : > { %3792 = vmatpush3.bf16.msra.mxu0 %v4035_v21 }
 0x30f   : > { %3793 = vmatprep.subr.bf16.mxu0 %v4036_v22 }
 0x312   : > { %3794 = vmatpush3.bf16.msra.mxu0 %v4037_v23  ;;  %v1755_v23 = vsel %vm616_vm3, %v1752_v19, 0.0 }
 0x313   : > { %3795 = vmatprep.subr.bf16.mxu0 %v4038_v24 }
 0x316   : > { %3796 = vmatpush3.bf16.msra.mxu0 %v4039_v26 }
 0x317   : > { %2071 = vmatprep.subr.bf16.mxu0 %v4467_v11 }
 0x319   : > { %1742 = vmatmul.mubr.bf16.vlgmr.msra.gmra.mrb[12].mxu0 %v4411_v59 }
 0x31a   : > { %2072 = vmatpush1.bf16.msra.mxu0 %v4469_v12  ;;  %2103 = vmatprep.mubr.bf16.mxu0 %v4168_v4 }
 0x31b   : > { %3825 = vmatprep.subr.bf16.mxu0 %v4056_v18 }
 0x3cc   : > { %v1481_v29 = vpop.f32.mrb[8].mxu0 }
 0x3cd   : > { %v1482_v30 = vadd.f32 %v1481_v29, %v1442_v28  ;;  %v1483_v32 = vpop.f32.mrb[9].mxu0 }
 0x3ce   : > { %v1484_v42 = vadd.f32 %v1483_v32, %v1443_v31  ;;  %v1485_v33 = vpop.f32.mrb[10].mxu0 }
 0x3cf   : > { %v1486_v34 = vpop.f32.mrb[11].mxu0 }
 0x3d0   : > { %v1490_v35 = vcombine.low %v1482_v30, %v1484_v42  ;;  %v1491_v36 = vcombine.high %v1482_v30, %v1484_v42 }
 0x3d2   : > { %v1498_v37 = vrot.slane %v1490_v35, %v4562_v17  ;;  %v1505_v38 = vrot.slane %v1491_v36, %v4562_v17 }
 0x3d4   : > { %v1506_v39 = vcombine.high %v1498_v37, %v1498_v37  ;;  %v1507_v40 = vcombine.high %v1505_v38, %v1505_v38  ;;  %v1514_v41 = vrot.slane %v1498_v37, %v4562_v17  ;;  %v1521_v44 = vrot.slane %v1505_v38, %v4562_v17 }
 0x3d6   : > { %v1528_v45 = vrot.slane %v1506_v39, %v4562_v17  ;;  %v1535_v46 = vrot.slane %v1507_v40, %v4562_v17  ;;  %v1536_v47 = vcombine.high %v1514_v41, %v1514_v41  ;;  %v1537_v48 = vcombine.high %v1521_v44, %v1521_v44  ;;  %3383 = vst.msk [vmem:[%s4576_s23 + $0x2] ss:$8 sm:$0x3] %vm4568_vm4, %v1514_v41 }
 0x3d7   : > { %3387 = vst.msk [vmem:[%s4576_s23 + $0x42] ss:$8 sm:$0x3] %vm4568_vm4, %v1521_v44  ;;  %v3483_v44 = vld [vmem:[%s5178_s4 + $0x4] ss:$0 sm:$0xff] }
 0x3d8   : > { %v1538_v49 = vcombine.high %v1528_v45, %v1528_v45  ;;  %v1539_v50 = vcombine.high %v1535_v46, %v1535_v46  ;;  %3384 = vst.msk [vmem:[%s4576_s23 + $0x12] ss:$8 sm:$0x3] %vm4568_vm4, %v1528_v45  ;;  %3385 = vst.msk [vmem:[%s4576_s23 + $0x22] ss:$8 sm:$0x3] %vm4568_vm4, %v1536_v47 }
 0x3d9   : > { %3388 = vst.msk [vmem:[%s4576_s23 + $0x52] ss:$8 sm:$0x3] %vm4568_vm4, %v1535_v46  ;;  %3389 = vst.msk [vmem:[%s4576_s23 + $0x62] ss:$8 sm:$0x3] %vm4568_vm4, %v1537_v48 }
 0x3da   : > { %3386 = vst.msk [vmem:[%s4576_s23 + $0x32] ss:$8 sm:$0x3] %vm4568_vm4, %v1538_v49  ;;  %3390 = vst.msk [vmem:[%s4576_s23 + $0x72] ss:$8 sm:$0x3] %vm4568_vm4, %v1539_v50 }
 0x3db   : > { %v4057_v50 = vld [vmem:[%s5177_s3 + $0x280] sm:$0xff]  }
 0x3ec   : > { %v3797_v51 = vpop.f32.mrb[12].mxu0 }
 0x3ed   : > { %v3798_v53 = vpop.f32.mrb[13].mxu0 }
 0x3ee   : > { %v3799_v54 = vadd.f32 %v3798_v53, %v3797_v51  ;;  %v3800_v55 = vpop.f32.mrb[14].mxu0  ;;  %v4059_v53 = vld [vmem:[%s5177_s3 + $0x288] sm:$0xff]  }
 0x3ef   : > { %v3801_v56 = vpop.f32.mrb[15].mxu0  ;;  %v4061_v55 = vld [vmem:[%s5177_s3 + $0x290] sm:$0xff]  }
 0x3f0   : > { %v1744_v58 = vadd.f32 %v3799_v54, %v3424_v52  ;;  %v4058_v52 = vld [vmem:[%s5177_s3 + $0x2c8] sm:$0xff]   ;;  %v4060_v54 = vld [vmem:[%s5177_s3 + $0x2d0] sm:$0xff]   ;;  %v4062_v56 = vld [vmem:[%s5177_s3 + $0x2d8] sm:$0xff]  }
 0x3f2   : > { %v1749_v61 = vpack.c.bf16 %v1744_v58, %v1744_v58  ;;  %v4063_v58 = vld [vmem:[%s5177_s3 + $0x298] sm:$0xff]  }
 0x3f4   : > { %3441 = vmatmul.mubr.msk.bf16.vlgmr.msra.gmra.mrb[20].mxu1 %vm816_vm1, %v1749_v61  ;;  %v4065_v61 = vld [vmem:[%s5177_s3 + $0x2a0] sm:$0xff]  }
 0x3f5   : > { %3804 = vmatpush3.bf16.msra.mxu1 %v4041_v60  ;;  %2053 = vmatprep.mubr.bf16.mxu1 %v4406_v57  ;;  %v4064_v60 = vld [vmem:[%s5177_s3 + $0x2e0] sm:$0xff]  }
 0x3f6   : > { %3805 = vmatprep.subr.bf16.mxu1 %v4042_v62  ;;  %v4066_v62 = vld [vmem:[%s5177_s3 + $0x2e8] sm:$0xff]  }
 0x3f9   : > { %3806 = vmatpush3.bf16.msra.mxu1 %v4043_v63  ;;  %v4067_v63 = vld [vmem:[%s5177_s3 + $0x2a8] sm:$0xff]  }
 0x3fa   : > { %3807 = vmatprep.subr.bf16.mxu1 %v4044_v0  ;;  %v4068_v0 = vld [vmem:[%s5177_s3 + $0x2f0] sm:$0xff]  }
 0x3fd   : > { %3808 = vmatpush3.bf16.msra.mxu1 %v4045_v1  ;;  %v4069_v1 = vld [vmem:[%s5177_s3 + $0x2b0] sm:$0xff]  }
 0x3fe   : > { %3809 = vmatprep.subr.bf16.mxu1 %v4046_v2  ;;  %v4070_v2 = vld [vmem:[%s5177_s3 + $0x2f8] sm:$0xff]  }
 0x401   : > { %3810 = vmatpush3.bf16.msra.mxu1 %v4047_v5  ;;  %v4071_v5 = vld [vmem:[%s5177_s3 + $0x2b8] sm:$0xff]  }
 0x402   : > { %3811 = vmatprep.subr.bf16.mxu1 %v4048_v6  ;;  %v4072_v6 = vld [vmem:[%s5177_s3 + $0x340] sm:$0xff]  }
 0x405   : > { %3812 = vmatpush3.bf16.msra.mxu1 %v4049_v8  ;;  %v2064_v8 = vpop.permute.xlu1 %2063 }
 0x406   : > { %3813 = vmatprep.subr.bf16.mxu1 %v4050_v9  ;;  %v2066_v9 = vsel %vm615_vm2, %v2064_v8, 0.0 }
 0x409   : > { %3814 = vmatpush3.bf16.msra.mxu1 %v4051_v10 }
 0x40a   : > { %3815 = vmatprep.subr.bf16.mxu1 %v4052_v13 }
 0x40d   : > { %3816 = vmatpush3.bf16.msra.mxu1 %v4053_v14  ;;  %v2067_v14 = vsel %vm616_vm3, %v2064_v8, 0.0 }
 0x40e   : > { %3817 = vmatprep.subr.bf16.mxu1 %v4054_v15 }
 0x411   : > { %3818 = vmatpush3.bf16.msra.mxu1 %v4055_v16 }
 0x412   : > { %2383 = vmatprep.subr.bf16.mxu1 %v4467_v11 }
 0x414   : > { %2054 = vmatmul.mubr.bf16.vlgmr.msra.gmra.mrb[24].mxu1 %v4411_v59 }
 0x415   : > { %2384 = vmatpush1.bf16.msra.mxu1 %v4469_v12  ;;  %2415 = vmatprep.mubr.bf16.mxu1 %v4168_v4 }
 0x416   : > { %3847 = vmatprep.subr.bf16.mxu1 %v4072_v6 }
 0x4c7   : > { %v1793_v21 = vpop.f32.mrb[20].mxu1 }
 0x4c8   : > { %v1794_v22 = vadd.f32 %v1793_v21, %v1754_v20  ;;  %v1795_v24 = vpop.f32.mrb[21].mxu1 }
 0x4c9   : > { %v1796_v26 = vadd.f32 %v1795_v24, %v1755_v23  ;;  %v1797_v27 = vpop.f32.mrb[22].mxu1 }
 0x4ca   : > { %v1798_v43 = vpop.f32.mrb[23].mxu1 }
 0x4cb   : > { %v1802_v28 = vcombine.low %v1794_v22, %v1796_v26  ;;  %v1803_v29 = vcombine.high %v1794_v22, %v1796_v26 }
 0x4cd   : > { %v1810_v30 = vrot.slane %v1802_v28, %v4562_v17  ;;  %v1817_v31 = vrot.slane %v1803_v29, %v4562_v17 }
 0x4cf   : > { %v1818_v32 = vcombine.high %v1810_v30, %v1810_v30  ;;  %v1819_v42 = vcombine.high %v1817_v31, %v1817_v31  ;;  %v1826_v33 = vrot.slane %v1810_v30, %v4562_v17  ;;  %v1833_v34 = vrot.slane %v1817_v31, %v4562_v17 }
 0x4d1   : > { %v1840_v35 = vrot.slane %v1818_v32, %v4562_v17  ;;  %v1847_v36 = vrot.slane %v1819_v42, %v4562_v17  ;;  %v1848_v37 = vcombine.high %v1826_v33, %v1826_v33  ;;  %v1849_v38 = vcombine.high %v1833_v34, %v1833_v34  ;;  %3442 = vst.msk [vmem:[%s4576_s23 + $0x3] ss:$8 sm:$0x3] %vm4568_vm4, %v1826_v33 }
 0x4d2   : > { %3446 = vst.msk [vmem:[%s4576_s23 + $0x43] ss:$8 sm:$0x3] %vm4568_vm4, %v1833_v34  ;;  %v3542_v34 = vld [vmem:[%s5178_s4 + $0x5] ss:$0 sm:$0xff] }
 0x4d3   : > { %v1850_v39 = vcombine.high %v1840_v35, %v1840_v35  ;;  %v1851_v40 = vcombine.high %v1847_v36, %v1847_v36  ;;  %3443 = vst.msk [vmem:[%s4576_s23 + $0x13] ss:$8 sm:$0x3] %vm4568_vm4, %v1840_v35  ;;  %3444 = vst.msk [vmem:[%s4576_s23 + $0x23] ss:$8 sm:$0x3] %vm4568_vm4, %v1848_v37 }
 0x4d4   : > { %3447 = vst.msk [vmem:[%s4576_s23 + $0x53] ss:$8 sm:$0x3] %vm4568_vm4, %v1847_v36  ;;  %3448 = vst.msk [vmem:[%s4576_s23 + $0x63] ss:$8 sm:$0x3] %vm4568_vm4, %v1849_v38 }
 0x4d5   : > { %3445 = vst.msk [vmem:[%s4576_s23 + $0x33] ss:$8 sm:$0x3] %vm4568_vm4, %v1850_v39  ;;  %3449 = vst.msk [vmem:[%s4576_s23 + $0x73] ss:$8 sm:$0x3] %vm4568_vm4, %v1851_v40 }
 0x4d6   : > { %v4073_v40 = vld [vmem:[%s5177_s3 + $0x300] sm:$0xff]  }
 0x4e7   : > { %v3819_v41 = vpop.f32.mrb[24].mxu1 }
 0x4e8   : > { %v3820_v45 = vpop.f32.mrb[25].mxu1 }
 0x4e9   : > { %v3821_v46 = vadd.f32 %v3820_v45, %v3819_v41  ;;  %v3822_v47 = vpop.f32.mrb[26].mxu1  ;;  %v4075_v45 = vld [vmem:[%s5177_s3 + $0x308] sm:$0xff]  }
 0x4ea   : > { %v3823_v48 = vpop.f32.mrb[27].mxu1  ;;  %v4077_v47 = vld [vmem:[%s5177_s3 + $0x310] sm:$0xff]  }
 0x4eb   : > { %v2056_v49 = vadd.f32 %v3821_v46, %v3483_v44  ;;  %v4074_v44 = vld [vmem:[%s5177_s3 + $0x348] sm:$0xff]   ;;  %v4076_v46 = vld [vmem:[%s5177_s3 + $0x350] sm:$0xff]   ;;  %v4078_v48 = vld [vmem:[%s5177_s3 + $0x358] sm:$0xff]  }
 0x4ed   : > { %v2061_v51 = vpack.c.bf16 %v2056_v49, %v2056_v49  ;;  %v4079_v49 = vld [vmem:[%s5177_s3 + $0x318] sm:$0xff]  }
 0x4ef   : > { %3500 = vmatmul.mubr.msk.bf16.vlgmr.msra.gmra.mrb[16].mxu0 %vm816_vm1, %v2061_v51  ;;  %v4081_v51 = vld [vmem:[%s5177_s3 + $0x320] sm:$0xff]  }
 0x4f0   : > { %3826 = vmatpush3.bf16.msra.mxu0 %v4057_v50  ;;  %2365 = vmatprep.mubr.bf16.mxu0 %v4406_v57  ;;  %v4080_v50 = vld [vmem:[%s5177_s3 + $0x360] sm:$0xff]  }
 0x4f1   : > { %3827 = vmatprep.subr.bf16.mxu0 %v4058_v52  ;;  %v4082_v52 = vld [vmem:[%s5177_s3 + $0x368] sm:$0xff]  }
 0x4f4   : > { %3828 = vmatpush3.bf16.msra.mxu0 %v4059_v53  ;;  %v4083_v53 = vld [vmem:[%s5177_s3 + $0x328] sm:$0xff]  }
 0x4f5   : > { %3829 = vmatprep.subr.bf16.mxu0 %v4060_v54  ;;  %v4084_v54 = vld [vmem:[%s5177_s3 + $0x370] sm:$0xff]  }
 0x4f8   : > { %3830 = vmatpush3.bf16.msra.mxu0 %v4061_v55  ;;  %v4085_v55 = vld [vmem:[%s5177_s3 + $0x330] sm:$0xff]  }
 0x4f9   : > { %3831 = vmatprep.subr.bf16.mxu0 %v4062_v56  ;;  %v4086_v56 = vld [vmem:[%s5177_s3 + $0x378] sm:$0xff]  }
 0x4fc   : > { %3832 = vmatpush3.bf16.msra.mxu0 %v4063_v58  ;;  %v4087_v58 = vld [vmem:[%s5177_s3 + $0x338] sm:$0xff]  }
 0x4fd   : > { %3833 = vmatprep.subr.bf16.mxu0 %v4064_v60  ;;  %v4088_v60 = vld [vmem:[%s5177_s3 + $0x3c0] sm:$0xff]  }
 0x500   : > { %3834 = vmatpush3.bf16.msra.mxu0 %v4065_v61  ;;  %v2376_v61 = vpop.permute.xlu0 %2375 }
 0x501   : > { %3835 = vmatprep.subr.bf16.mxu0 %v4066_v62  ;;  %v2378_v62 = vsel %vm615_vm2, %v2376_v61, 0.0 }
 0x504   : > { %3836 = vmatpush3.bf16.msra.mxu0 %v4067_v63 }
 0x505   : > { %3837 = vmatprep.subr.bf16.mxu0 %v4068_v0  ;;  %v2379_v0 = vsel %vm616_vm3, %v2376_v61, 0.0 }
 0x508   : > { %3838 = vmatpush3.bf16.msra.mxu0 %v4069_v1 }
 0x509   : > { %3839 = vmatprep.subr.bf16.mxu0 %v4070_v2 }
 0x50c   : > { %3840 = vmatpush3.bf16.msra.mxu0 %v4071_v5 }
 0x50d   : > { %2695 = vmatprep.subr.bf16.mxu0 %v4467_v11 }
 0x50f   : > { %2366 = vmatmul.mubr.bf16.vlgmr.msra.gmra.mrb[20].mxu0 %v4411_v59 }
 0x510   : > { %2696 = vmatpush1.bf16.msra.mxu0 %v4469_v12  ;;  %2727 = vmatprep.mubr.bf16.mxu0 %v4168_v4 }
 0x511   : > { %3869 = vmatprep.subr.bf16.mxu0 %v4088_v60 }
 0x5c2   : > { %v2105_v10 = vpop.f32.mrb[16].mxu0 }
 0x5c3   : > { %v2106_v13 = vadd.f32 %v2105_v10, %v2066_v9  ;;  %v2107_v15 = vpop.f32.mrb[17].mxu0 }
 0x5c4   : > { %v2108_v16 = vadd.f32 %v2107_v15, %v2067_v14  ;;  %v2109_v18 = vpop.f32.mrb[18].mxu0 }
 0x5c5   : > { %v2110_v19 = vpop.f32.mrb[19].mxu0 }
 0x5c6   : > { %v2114_v20 = vcombine.low %v2106_v13, %v2108_v16  ;;  %v2115_v21 = vcombine.high %v2106_v13, %v2108_v16 }
 0x5c8   : > { %v2122_v22 = vrot.slane %v2114_v20, %v4562_v17  ;;  %v2129_v23 = vrot.slane %v2115_v21, %v4562_v17 }
 0x5ca   : > { %v2130_v24 = vcombine.high %v2122_v22, %v2122_v22  ;;  %v2131_v26 = vcombine.high %v2129_v23, %v2129_v23  ;;  %v2138_v27 = vrot.slane %v2122_v22, %v4562_v17  ;;  %v2145_v43 = vrot.slane %v2129_v23, %v4562_v17 }
 0x5cc   : > { %v2152_v28 = vrot.slane %v2130_v24, %v4562_v17  ;;  %v2159_v29 = vrot.slane %v2131_v26, %v4562_v17  ;;  %v2160_v30 = vcombine.high %v2138_v27, %v2138_v27  ;;  %v2161_v31 = vcombine.high %v2145_v43, %v2145_v43  ;;  %3501 = vst.msk [vmem:[%s4576_s23 + $0x4] ss:$8 sm:$0x3] %vm4568_vm4, %v2138_v27  ;;  %v3601_v24 = vld [vmem:[%s5178_s4 + $0x6] ss:$0 sm:$0xff] }
 0x5cd   : > { %3505 = vst.msk [vmem:[%s4576_s23 + $0x44] ss:$8 sm:$0x3] %vm4568_vm4, %v2145_v43 }
 0x5ce   : > { %v2162_v32 = vcombine.high %v2152_v28, %v2152_v28  ;;  %v2163_v42 = vcombine.high %v2159_v29, %v2159_v29  ;;  %3502 = vst.msk [vmem:[%s4576_s23 + $0x14] ss:$8 sm:$0x3] %vm4568_vm4, %v2152_v28  ;;  %3503 = vst.msk [vmem:[%s4576_s23 + $0x24] ss:$8 sm:$0x3] %vm4568_vm4, %v2160_v30 }
 0x5cf   : > { %3506 = vst.msk [vmem:[%s4576_s23 + $0x54] ss:$8 sm:$0x3] %vm4568_vm4, %v2159_v29  ;;  %3507 = vst.msk [vmem:[%s4576_s23 + $0x64] ss:$8 sm:$0x3] %vm4568_vm4, %v2161_v31 }
 0x5d0   : > { %3504 = vst.msk [vmem:[%s4576_s23 + $0x34] ss:$8 sm:$0x3] %vm4568_vm4, %v2162_v32  ;;  %3508 = vst.msk [vmem:[%s4576_s23 + $0x74] ss:$8 sm:$0x3] %vm4568_vm4, %v2163_v42 }
 0x5d1   : > { %v4089_v30 = vld [vmem:[%s5177_s3 + $0x380] sm:$0xff]   ;;  %v4090_v32 = vld [vmem:[%s5177_s3 + $0x3c8] sm:$0xff]  }
 0x5d2   : > { %v4091_v42 = vld [vmem:[%s5177_s3 + $0x388] sm:$0xff]  }
 0x5e2   : > { %v3841_v33 = vpop.f32.mrb[20].mxu0 }
 0x5e3   : > { %v3842_v35 = vpop.f32.mrb[21].mxu0 }
 0x5e4   : > { %v3843_v36 = vadd.f32 %v3842_v35, %v3841_v33  ;;  %v3844_v37 = vpop.f32.mrb[22].mxu0  ;;  %v4092_v33 = vld [vmem:[%s5177_s3 + $0x3d0] sm:$0xff]   ;;  %v4094_v35 = vld [vmem:[%s5177_s3 + $0x3d8] sm:$0xff]  }
 0x5e5   : > { %v3845_v38 = vpop.f32.mrb[23].mxu0  ;;  %v4097_v37 = vld [vmem:[%s5177_s3 + $0x3a0] sm:$0xff]  }
 0x5e6   : > { %v2368_v39 = vadd.f32 %v3843_v36, %v3542_v34  ;;  %v4093_v34 = vld [vmem:[%s5177_s3 + $0x390] sm:$0xff]   ;;  %v4096_v36 = vld [vmem:[%s5177_s3 + $0x3e0] sm:$0xff]   ;;  %v4098_v38 = vld [vmem:[%s5177_s3 + $0x3e8] sm:$0xff]  }
 0x5e8   : > { %v2373_v41 = vpack.c.bf16 %v2368_v39, %v2368_v39  ;;  %v4099_v39 = vld [vmem:[%s5177_s3 + $0x3a8] sm:$0xff]  }
 0x5ea   : > { %3559 = vmatmul.mubr.msk.bf16.vlgmr.msra.gmra.mrb[28].mxu1 %vm816_vm1, %v2373_v41  ;;  %v4101_v41 = vld [vmem:[%s5177_s3 + $0x3b0] sm:$0xff]  }
 0x5eb   : > { %3848 = vmatpush3.bf16.msra.mxu1 %v4073_v40  ;;  %2677 = vmatprep.mubr.bf16.mxu1 %v4406_v57  ;;  %v4100_v40 = vld [vmem:[%s5177_s3 + $0x3f0] sm:$0xff]  }
 0x5ec   : > { %3849 = vmatprep.subr.bf16.mxu1 %v4074_v44  ;;  %v4102_v44 = vld [vmem:[%s5177_s3 + $0x3f8] sm:$0xff]  }
 0x5ef   : > { %3850 = vmatpush3.bf16.msra.mxu1 %v4075_v45  ;;  %v4103_v45 = vld [vmem:[%s5177_s3 + $0x3b8] sm:$0xff]  }
 0x5f0   : > { %3851 = vmatprep.subr.bf16.mxu1 %v4076_v46  ;;  %v2688_v46 = vpop.permute.xlu1 %2687 }
 0x5f3   : > { %3852 = vmatpush3.bf16.msra.mxu1 %v4077_v47  ;;  %v2690_v47 = vsel %vm615_vm2, %v2688_v46, 0.0 }
 0x5f4   : > { %3853 = vmatprep.subr.bf16.mxu1 %v4078_v48 }
 0x5f7   : > { %3854 = vmatpush3.bf16.msra.mxu1 %v4079_v49 }
 0x5f8   : > { %3855 = vmatprep.subr.bf16.mxu1 %v4080_v50  ;;  %v2691_v50 = vsel %vm616_vm3, %v2688_v46, 0.0 }
 0x5fb   : > { %3856 = vmatpush3.bf16.msra.mxu1 %v4081_v51 }
 0x5fc   : > { %3857 = vmatprep.subr.bf16.mxu1 %v4082_v52 }
 0x5ff   : > { %3858 = vmatpush3.bf16.msra.mxu1 %v4083_v53 }
 0x600   : > { %3859 = vmatprep.subr.bf16.mxu1 %v4084_v54 }
 0x603   : > { %3860 = vmatpush3.bf16.msra.mxu1 %v4085_v55 }
 0x604   : > { %3861 = vmatprep.subr.bf16.mxu1 %v4086_v56 }
 0x607   : > { %3862 = vmatpush3.bf16.msra.mxu1 %v4087_v58 }
 0x608   : > { %3007 = vmatprep.subr.bf16.mxu1 %v4467_v11 }
 0x60a   : > { %2678 = vmatmul.mubr.bf16.vlgmr.msra.gmra.mrb[32].mxu1 %v4411_v59 }
 0x60b   : > { %3008 = vmatpush1.bf16.msra.mxu1 %v4469_v12  ;;  %3039 = vmatprep.mubr.bf16.mxu1 %v4168_v4 }
 0x6bd   : > { %v2417_v63 = vpop.f32.mrb[28].mxu1 }
 0x6be   : > { %v2418_v11 = vadd.f32 %v2417_v63, %v2378_v62  ;;  %v2419_v1 = vpop.f32.mrb[29].mxu1 }
 0x6bf   : > { %v2420_v2 = vadd.f32 %v2419_v1, %v2379_v0  ;;  %v2421_v12 = vpop.f32.mrb[30].mxu1 }
 0x6c0   : > { %v2422_v4 = vpop.f32.mrb[31].mxu1 }
 0x6c1   : > { %v2426_v5 = vcombine.low %v2418_v11, %v2420_v2  ;;  %v2427_v6 = vcombine.high %v2418_v11, %v2420_v2 }
 0x6c3   : > { %v2434_v8 = vrot.slane %v2426_v5, %v4562_v17  ;;  %v2441_v9 = vrot.slane %v2427_v6, %v4562_v17  ;;  %v3660_v6 = vld [vmem:[%s5178_s4 + $0x7] ss:$0 sm:$0xff] }
 0x6c5   : > { %v2442_v10 = vcombine.high %v2434_v8, %v2434_v8  ;;  %v2443_v13 = vcombine.high %v2441_v9, %v2441_v9  ;;  %v2450_v14 = vrot.slane %v2434_v8, %v4562_v17  ;;  %v2457_v15 = vrot.slane %v2441_v9, %v4562_v17 }
 0x6c7   : > { %v2464_v16 = vrot.slane %v2442_v10, %v4562_v17  ;;  %v2471_v18 = vrot.slane %v2443_v13, %v4562_v17  ;;  %v2472_v19 = vcombine.high %v2450_v14, %v2450_v14  ;;  %v2473_v20 = vcombine.high %v2457_v15, %v2457_v15  ;;  %3560 = vst.msk [vmem:[%s4576_s23 + $0x5] ss:$8 sm:$0x3] %vm4568_vm4, %v2450_v14 }
 0x6c8   : > { %3564 = vst.msk [vmem:[%s4576_s23 + $0x45] ss:$8 sm:$0x3] %vm4568_vm4, %v2457_v15 }
 0x6c9   : > { %v2474_v21 = vcombine.high %v2464_v16, %v2464_v16  ;;  %v2475_v22 = vcombine.high %v2471_v18, %v2471_v18  ;;  %3561 = vst.msk [vmem:[%s4576_s23 + $0x15] ss:$8 sm:$0x3] %vm4568_vm4, %v2464_v16  ;;  %3562 = vst.msk [vmem:[%s4576_s23 + $0x25] ss:$8 sm:$0x3] %vm4568_vm4, %v2472_v19  ;;  %v3000_v16 = vpop.permute.xlu1 %2999 }
 0x6ca   : > { %3565 = vst.msk [vmem:[%s4576_s23 + $0x55] ss:$8 sm:$0x3] %vm4568_vm4, %v2471_v18  ;;  %3566 = vst.msk [vmem:[%s4576_s23 + $0x65] ss:$8 sm:$0x3] %vm4568_vm4, %v2473_v20 }
 0x6cb   : > { %3563 = vst.msk [vmem:[%s4576_s23 + $0x35] ss:$8 sm:$0x3] %vm4568_vm4, %v2474_v21  ;;  %3567 = vst.msk [vmem:[%s4576_s23 + $0x75] ss:$8 sm:$0x3] %vm4568_vm4, %v2475_v22 }
 0x6cc   : > { %v3002_v18 = vsel %vm615_vm2, %v3000_v16, 0.0  ;;  %v3003_v20 = vsel %vm616_vm3, %v3000_v16, 0.0 }
 0x6dd   : > { %v3863_v23 = vpop.f32.mrb[32].mxu1 }
 0x6de   : > { %v3864_v26 = vpop.f32.mrb[33].mxu1 }
 0x6df   : > { %v3865_v27 = vadd.f32 %v3864_v26, %v3863_v23  ;;  %v3866_v43 = vpop.f32.mrb[34].mxu1 }
 0x6e0   : > { %v3867_v28 = vpop.f32.mrb[35].mxu1 }
 0x6e1   : > { %v2680_v29 = vadd.f32 %v3865_v27, %v3601_v24 }
 0x6e3   : > { %v2685_v31 = vpack.c.bf16 %v2680_v29, %v2680_v29 }
 0x6e5   : > { %3618 = vmatmul.mubr.msk.bf16.vlgmr.msra.gmra.mrb[24].mxu0 %vm816_vm1, %v2685_v31 }
 0x6e6   : > { %3870 = vmatpush3.bf16.msra.mxu0 %v4089_v30  ;;  %2989 = vmatprep.mubr.bf16.mxu0 %v4406_v57  ;;  %v4095_v57 = vld [vmem:[%s5177_s3 + $0x398] sm:$0xff]  }
 0x6e7   : > { %3871 = vmatprep.subr.bf16.mxu0 %v4090_v32 }
 0x6ea   : > { %3872 = vmatpush3.bf16.msra.mxu0 %v4091_v42 }
 0x6eb   : > { %3873 = vmatprep.subr.bf16.mxu0 %v4092_v33 }
 0x6ee   : > { %3874 = vmatpush3.bf16.msra.mxu0 %v4093_v34 }
 0x6ef   : > { %3875 = vmatprep.subr.bf16.mxu0 %v4094_v35 }
 0x6f2   : > { %3876 = vmatpush3.bf16.msra.mxu0 %v4095_v57 }
 0x6f3   : > { %3877 = vmatprep.subr.bf16.mxu0 %v4096_v36 }
 0x6f6   : > { %3878 = vmatpush3.bf16.msra.mxu0 %v4097_v37 }
 0x6f7   : > { %3879 = vmatprep.subr.bf16.mxu0 %v4098_v38 }
 0x6fa   : > { %3880 = vmatpush3.bf16.msra.mxu0 %v4099_v39 }
 0x6fb   : > { %3881 = vmatprep.subr.bf16.mxu0 %v4100_v40 }
 0x6fe   : > { %3882 = vmatpush3.bf16.msra.mxu0 %v4101_v41 }
 0x6ff   : > { %3883 = vmatprep.subr.bf16.mxu0 %v4102_v44 }
 0x702   : > { %3884 = vmatpush3.bf16.msra.mxu0 %v4103_v45 }
 0x705   : > { %2990 = vmatmul.mubr.bf16.vlgmr.msra.gmra.mrb[28].mxu0 %v4411_v59 }
 0x7b8   : > { %v2729_v48 = vpop.f32.mrb[24].mxu0 }
 0x7b9   : > { %v2730_v49 = vadd.f32 %v2729_v48, %v2690_v47  ;;  %v2731_v51 = vpop.f32.mrb[25].mxu0 }
 0x7ba   : > { %v2732_v52 = vadd.f32 %v2731_v51, %v2691_v50  ;;  %v2733_v53 = vpop.f32.mrb[26].mxu0 }
 0x7bb   : > { %v2734_v54 = vpop.f32.mrb[27].mxu0 }
 0x7bc   : > { %v2738_v55 = vcombine.low %v2730_v49, %v2732_v52  ;;  %v2739_v56 = vcombine.high %v2730_v49, %v2732_v52 }
 0x7be   : > { %v2746_v59 = vrot.slane %v2738_v55, %v4562_v17  ;;  %v2753_v58 = vrot.slane %v2739_v56, %v4562_v17 }
 0x7c0   : > { %v2754_v60 = vcombine.high %v2746_v59, %v2746_v59  ;;  %v2755_v61 = vcombine.high %v2753_v58, %v2753_v58  ;;  %v2762_v62 = vrot.slane %v2746_v59, %v4562_v17  ;;  %v2769_v63 = vrot.slane %v2753_v58, %v4562_v17 }
 0x7c2   : > { %v2776_v0 = vrot.slane %v2754_v60, %v4562_v17  ;;  %v2783_v11 = vrot.slane %v2755_v61, %v4562_v17  ;;  %v2784_v1 = vcombine.high %v2762_v62, %v2762_v62  ;;  %v2785_v2 = vcombine.high %v2769_v63, %v2769_v63  ;;  %3619 = vst.msk [vmem:[%s4576_s23 + $0x6] ss:$8 sm:$0x3] %vm4568_vm4, %v2762_v62 }
 0x7c3   : > { %3623 = vst.msk [vmem:[%s4576_s23 + $0x46] ss:$8 sm:$0x3] %vm4568_vm4, %v2769_v63 }
 0x7c4   : > { %v2786_v12 = vcombine.high %v2776_v0, %v2776_v0  ;;  %v2787_v4 = vcombine.high %v2783_v11, %v2783_v11  ;;  %3620 = vst.msk [vmem:[%s4576_s23 + $0x16] ss:$8 sm:$0x3] %vm4568_vm4, %v2776_v0  ;;  %3621 = vst.msk [vmem:[%s4576_s23 + $0x26] ss:$8 sm:$0x3] %vm4568_vm4, %v2784_v1 }
 0x7c5   : > { %3624 = vst.msk [vmem:[%s4576_s23 + $0x56] ss:$8 sm:$0x3] %vm4568_vm4, %v2783_v11  ;;  %3625 = vst.msk [vmem:[%s4576_s23 + $0x66] ss:$8 sm:$0x3] %vm4568_vm4, %v2785_v2 }
 0x7c6   : > { %3622 = vst.msk [vmem:[%s4576_s23 + $0x36] ss:$8 sm:$0x3] %vm4568_vm4, %v2786_v12  ;;  %3626 = vst.msk [vmem:[%s4576_s23 + $0x76] ss:$8 sm:$0x3] %vm4568_vm4, %v2787_v4 }
 0x7d8   : > { %v3885_v5 = vpop.f32.mrb[28].mxu0 }
 0x7d9   : > { %v3886_v8 = vpop.f32.mrb[29].mxu0 }
 0x7da   : > { %v3887_v9 = vadd.f32 %v3886_v8, %v3885_v5  ;;  %v3888_v10 = vpop.f32.mrb[30].mxu0 }
 0x7db   : > { %v3889_v13 = vpop.f32.mrb[31].mxu0 }
 0x7dc   : > { %v2992_v14 = vadd.f32 %v3887_v9, %v3660_v6 }
 0x7de   : > { %v2997_v15 = vpack.c.bf16 %v2992_v14, %v2992_v14 }
 0x7e0   : > { %3677 = vmatmul.mubr.msk.bf16.vlgmr.msra.gmra.mrb[36].mxu1 %vm816_vm1, %v2997_v15 }
 0x8b3   : > { %v3041_v19 = vpop.f32.mrb[36].mxu1 }
 0x8b4   : > { %v3042_v21 = vadd.f32 %v3041_v19, %v3002_v18  ;;  %v3043_v22 = vpop.f32.mrb[37].mxu1 }
 0x8b5   : > { %v3044_v23 = vadd.f32 %v3043_v22, %v3003_v20  ;;  %v3045_v24 = vpop.f32.mrb[38].mxu1 }
 0x8b6   : > { %v3046_v26 = vpop.f32.mrb[39].mxu1 }
 0x8b7   : > { %v3050_v27 = vcombine.low %v3042_v21, %v3044_v23  ;;  %v3051_v43 = vcombine.high %v3042_v21, %v3044_v23 }
 0x8b9   : > { %v3058_v28 = vrot.slane %v3050_v27, %v4562_v17  ;;  %v3065_v3 = vrot.slane %v3051_v43, %v4562_v17 }
 0x8bb   : > { %v3066_v29 = vcombine.high %v3058_v28, %v3058_v28  ;;  %v3067_v30 = vcombine.high %v3065_v3, %v3065_v3  ;;  %v3074_v7 = vrot.slane %v3058_v28, %v4562_v17  ;;  %v3081_v31 = vrot.slane %v3065_v3, %v4562_v17 }
 0x8bd   : > { %v3088_v32 = vrot.slane %v3066_v29, %v4562_v17  ;;  %v3095_v42 = vrot.slane %v3067_v30, %v4562_v17  ;;  %v3096_v33 = vcombine.high %v3074_v7, %v3074_v7  ;;  %v3097_v34 = vcombine.high %v3081_v31, %v3081_v31  ;;  %3678 = vst.msk [vmem:[%s4576_s23 + $0x7] ss:$8 sm:$0x3] %vm4568_vm4, %v3074_v7 }
 0x8be   : > { %3682 = vst.msk [vmem:[%s4576_s23 + $0x47] ss:$8 sm:$0x3] %vm4568_vm4, %v3081_v31 }
 0x8bf   : > { %v3098_v35 = vcombine.high %v3088_v32, %v3088_v32  ;;  %v3099_v57 = vcombine.high %v3095_v42, %v3095_v42  ;;  %3679 = vst.msk [vmem:[%s4576_s23 + $0x17] ss:$8 sm:$0x3] %vm4568_vm4, %v3088_v32  ;;  %3680 = vst.msk [vmem:[%s4576_s23 + $0x27] ss:$8 sm:$0x3] %vm4568_vm4, %v3096_v33 }
 0x8c0   : > { %3683 = vst.msk [vmem:[%s4576_s23 + $0x57] ss:$8 sm:$0x3] %vm4568_vm4, %v3095_v42  ;;  %3684 = vst.msk [vmem:[%s4576_s23 + $0x67] ss:$8 sm:$0x3] %vm4568_vm4, %v3097_v34 }
 0x8c1   : > { %3681 = vst.msk [vmem:[%s4576_s23 + $0x37] ss:$8 sm:$0x3] %vm4568_vm4, %v3098_v35  ;;  %3685 = vst.msk [vmem:[%s4576_s23 + $0x77] ss:$8 sm:$0x3] %vm4568_vm4, %v3099_v57 }
 0x8c2   : > { %4117 = shalt.err (!%p4114_p5)
}
 0x8c3   : > { %s4118_s23 = scalar_lea.hbm %s5102_s20, 2048  ;;  %s4122_s13 = scalar_lea.hbm %s5182_s8, 4096 }
 0x8c4   : > { %p4119_p7 = scmp.ne.s32.totalorder %s5102_s20, %s4118_s23  ;;  %p4123_p12 = scmp.lt.u32.totalorder %s5102_s20, %s5182_s8 }
 0x8c5   : > { %p4124_p13 = scmp.lt.u32.totalorder %s4122_s13, %s4118_s23  ;;  %p4126_p1 = scmp.lt.u32.totalorder %s4118_s23, %s5102_s20 }
 0x8c6   : > { %p4120_p10 = pnand %p4119_p7, %p4264_p6 }
 0x8c7   : > { %p4125_p0 = por %p4124_p13, %p4123_p12 }
 0x8c8   : > { %p4121_p11 = pneg %p4120_p10 }
 0x8c9   : > { %p4127_p2 = por %p4126_p1, %p4125_p0 }
 0x8cb   : > { %p4128_p3 = pnand %p4127_p2, %p4121_p11 }
 0x8cd   : > { %4131 = shalt.err (!%p4128_p3)
}
 0x8ce   : > { %s4178_s21 = smov 256   ;;  %s4179_s9 = smov 512  }
 0x8cf   : > { %s4180_s24 = smov 16  }
 0x8d0   : > { %3891 = dma.vmem_to_hbm [thread:$0]  (%p4264_p6), %s5112_s17, 2048, %s5102_s20, %s3133_s22, %s4178_s21, %s4179_s9, %s4180_s24  }
 0x8d1 PF: > { %s3161_s25 = sand.u32 1, %s4154_s27   ;;  %p3894_p4 = pnand %p3216_p9, %p4268_p8 }
 0x8d2   : > { %s3162_s23 = scalar_lea.sflag [#allocation4], %s3161_s25 }
 0x8d3   : > { %4149 = dma.done.wait (!%p3894_p4), %s3162_s23, 2048  }
 0x8d4   : > { %4151 = vsyncadd (!%p3894_p4), %s3162_s23, 4294965248  ;;  %p18_p5 = scmp.ge.s32.totalorder %s4249_s11, 4   ;;  %s5187_s27 = smov %s4158_s28 }
 0x8d5   : > { %s5188_s28 = smov %s4162_s29  ;;  %s5189_s29 = smov %s4262_s14 }
 0x8d6   : > { %s5190_s30 = smov %s4249_s11  ;;  %20 = sbr.rel (!%p18_p5) target bundleno = 3 (0x3), region = 207 }
 0x8dd   :  { %3167 = vsyncpa [#allocation4], 1 }
 0x8de   :  { %3169 = vsyncpa [#allocation4 + $0x1], 1 }

</bundles_post_ra>
